<compile_context>
chip_gen: v5e
topology: v5e:2x2
jax: 0.10.0
libtpu: 0.0.40
codegen_flags: <defaults>
</compile_context>

<pallas_src>
import math
import functools

import jax
import jax.numpy as jnp
from jax.experimental import pallas as pl
from jax.experimental.pallas import tpu as pltpu

EPS = 1e-5  # PyTorch LayerNorm default eps


def _layer_norm(x):
    mu = jnp.mean(x, axis=-1, keepdims=True)
    var = jnp.mean(jnp.square(x - mu), axis=-1, keepdims=True)
    return (x - mu) * jax.lax.rsqrt(var + EPS)


def _pick_tile(n, max_tile=1024):
    """Largest multiple of 128 that divides n and is <= max_tile (else n)."""
    if n <= max_tile:
        return n
    best = None
    t = 128
    while t <= max_tile:
        if n % t == 0:
            best = t
        t += 128
    return best if best is not None else n


# ----------------------------------------------------------------------------
# Multi-head attention core on already-projected q/k/v (values, not refs).
#   q: (T, C), k/v: (S, C).  Per-head loop only for the small score/context
#   products.  att (head-averaged softmax) only when requested.
# ----------------------------------------------------------------------------
def _mha(q, k, v, n_head, wp, bp, want_att):
    T, C = q.shape
    S = k.shape[0]
    hd = C // n_head
    inv_sqrt_d = 1.0 / math.sqrt(hd)

    ys = []
    att_acc = jnp.zeros((T, S), jnp.float32) if want_att else None
    for h in range(n_head):                       # static python loop (unrolled)
        lo = h * hd
        qh = (q[:, lo:lo + hd] * inv_sqrt_d).astype(jnp.bfloat16)   # (T, hd)
        kh = k[:, lo:lo + hd].astype(jnp.bfloat16)                  # (S, hd)
        vh = v[:, lo:lo + hd].astype(jnp.bfloat16)                  # (S, hd)
        s = jax.lax.dot_general(qh, kh, (((1,), (1,)), ((), ())),
                                preferred_element_type=jnp.float32)  # (T, S)
        s = s - jnp.max(s, axis=-1, keepdims=True)
        p = jnp.exp(s)
        p = p * pl.reciprocal(jnp.sum(p, axis=-1, keepdims=True), approx=True)
        if want_att:
            att_acc = att_acc + p
        ys.append(jnp.dot(p.astype(jnp.bfloat16), vh,
                          preferred_element_type=jnp.float32))       # (T, hd)
    y = jnp.concatenate(ys, axis=-1)                                  # (T, C)
    out = jnp.dot(y.astype(jnp.bfloat16), wp,
                  preferred_element_type=jnp.float32) + bp
    if want_att:
        return out, att_acc * (1.0 / n_head)
    return out, None


# ----------------------------------------------------------------------------
# Kernel 1: fused AdaLayerNorm + self-attention + residual add (no att output)
# ----------------------------------------------------------------------------
def _self_branch_kernel(x_ref, scale_ref, shift_ref,
                        wqkv_ref, bqkv_ref, wp_ref, bp_ref, o_ref, *, n_head):
    x = x_ref[...].astype(jnp.float32)                              # (T, C)
    C = x.shape[-1]
    xn = _layer_norm(x) * (1.0 + scale_ref[...]) + shift_ref[...]
    qkv = jnp.dot(xn.astype(jnp.bfloat16), wqkv_ref[...],
                  preferred_element_type=jnp.float32) + bqkv_ref[...]  # (T, 3C)
    q, k, v = qkv[:, :C], qkv[:, C:2 * C], qkv[:, 2 * C:]
    out, _ = _mha(q, k, v, n_head, wp_ref[...], bp_ref[...], want_att=False)
    o_ref[...] = x + out


def self_attn_branch(x, scale, shift, p, n_head):
    B, T, C = x.shape
    # PyTorch Linear stores (out,in); pack Q/K/V into one (C, 3C) matmul.
    wqkv = jnp.concatenate([p['wq'].T, p['wk'].T, p['wv'].T],
                           axis=1).astype(jnp.bfloat16)             # (C, 3C)
    bqkv = jnp.concatenate([p['bq'], p['bk'], p['bv']]).reshape(1, 3 * C)
    wp = p['wp'].T.astype(jnp.bfloat16)                             # (C, C)
    bp = p['bp'].reshape(1, C)
    scale3 = scale.reshape(B, 1, C)
    shift3 = shift.reshape(B, 1, C)

    kernel = functools.partial(_self_branch_kernel, n_head=n_head)
    return pl.pallas_call(
        kernel,
        out_shape=jax.ShapeDtypeStruct((B, T, C), jnp.float32),
        grid=(B,),
        in_specs=[
            pl.BlockSpec((None, T, C), lambda b: (b, 0, 0)),
            pl.BlockSpec((None, 1, C), lambda b: (b, 0, 0)),
            pl.BlockSpec((None, 1, C), lambda b: (b, 0, 0)),
            pl.BlockSpec((C, 3 * C), lambda b: (0, 0)),
            pl.BlockSpec((1, 3 * C), lambda b: (0, 0)),
            pl.BlockSpec((C, C), lambda b: (0, 0)),
            pl.BlockSpec((1, C), lambda b: (0, 0)),
        ],
        out_specs=pl.BlockSpec((None, T, C), lambda b: (b, 0, 0)),
        compiler_params=pltpu.CompilerParams(dimension_semantics=("parallel",)),
    )(x, scale3, shift3, wqkv, bqkv, wp, bp)


# ----------------------------------------------------------------------------
# Kernel 2: fused AdaLayerNorm + cross-attention + residual add (+ att output)
# ----------------------------------------------------------------------------
def _cross_branch_kernel(x_ref, enc_ref, scale_ref, shift_ref,
                         wq_ref, bq_ref, wkv_ref, bkv_ref,
                         wp_ref, bp_ref, o_ref, att_ref, *, n_head):
    x = x_ref[...].astype(jnp.float32)                              # (T, C)
    C = x.shape[-1]
    xn = _layer_norm(x) * (1.0 + scale_ref[...]) + shift_ref[...]
    q = jnp.dot(xn.astype(jnp.bfloat16), wq_ref[...],
                preferred_element_type=jnp.float32) + bq_ref[...]   # (T, C)
    enc = enc_ref[...].astype(jnp.bfloat16)                         # (S, Dk)
    kv = jnp.dot(enc, wkv_ref[...],
                 preferred_element_type=jnp.float32) + bkv_ref[...]  # (S, 2C)
    k, v = kv[:, :C], kv[:, C:]
    out, att = _mha(q, k, v, n_head, wp_ref[...], bp_ref[...], want_att=True)
    o_ref[...] = x + out
    att_ref[...] = att


def cross_attn_branch(x, enc, scale, shift, p, n_head):
    B, T, C = x.shape
    _, S, Dk = enc.shape
    wq = p['wq'].T.astype(jnp.bfloat16)                             # (C, C)
    bq = p['bq'].reshape(1, C)
    wkv = jnp.concatenate([p['wk'].T, p['wv'].T],
                          axis=1).astype(jnp.bfloat16)              # (Dk, 2C)
    bkv = jnp.concatenate([p['bk'], p['bv']]).reshape(1, 2 * C)
    wp = p['wp'].T.astype(jnp.bfloat16)                             # (C, C)
    bp = p['bp'].reshape(1, C)
    scale3 = scale.reshape(B, 1, C)
    shift3 = shift.reshape(B, 1, C)

    kernel = functools.partial(_cross_branch_kernel, n_head=n_head)
    y, att = pl.pallas_call(
        kernel,
        out_shape=(jax.ShapeDtypeStruct((B, T, C), jnp.float32),
                   jax.ShapeDtypeStruct((B, T, S), jnp.float32)),
        grid=(B,),
        in_specs=[
            pl.BlockSpec((None, T, C), lambda b: (b, 0, 0)),
            pl.BlockSpec((None, S, Dk), lambda b: (b, 0, 0)),
            pl.BlockSpec((None, 1, C), lambda b: (b, 0, 0)),
            pl.BlockSpec((None, 1, C), lambda b: (b, 0, 0)),
            pl.BlockSpec((C, C), lambda b: (0, 0)),
            pl.BlockSpec((1, C), lambda b: (0, 0)),
            pl.BlockSpec((Dk, 2 * C), lambda b: (0, 0)),
            pl.BlockSpec((1, 2 * C), lambda b: (0, 0)),
            pl.BlockSpec((C, C), lambda b: (0, 0)),
            pl.BlockSpec((1, C), lambda b: (0, 0)),
        ],
        out_specs=(pl.BlockSpec((None, T, C), lambda b: (b, 0, 0)),
                   pl.BlockSpec((None, T, S), lambda b: (b, 0, 0))),
        compiler_params=pltpu.CompilerParams(dimension_semantics=("parallel",)),
    )(x, enc, scale3, shift3, wq, bq, wkv, bkv, wp, bp)
    return y, att


# ----------------------------------------------------------------------------
# Kernel 3: fused LayerNorm(affine) + MLP (Linear -> GELU2 -> Linear) + residual.
# The hidden dim Ch is tiled over a second ("arbitrary") grid axis; the residual
# output tile stays resident in VMEM across the reduction and is accumulated
# in-place, so production sizes (Ch = 4*C = 4096) never hold full w1/w2 in VMEM.
# ----------------------------------------------------------------------------
def _ln_mlp_kernel(x_ref, g_ref, b_ref, w1_ref, b1_ref, w2_ref, b2_ref,
                   o_ref, xn_ref):
    @pl.when(pl.program_id(1) == 0)
    def _():
        x = x_ref[...].astype(jnp.float32)                          # (T, C)
        xn_ref[...] = _layer_norm(x) * g_ref[...] + b_ref[...]
        o_ref[...] = x + b2_ref[...]          # residual + final bias, once

    h = jnp.dot(xn_ref[...].astype(jnp.bfloat16), w1_ref[...],
                preferred_element_type=jnp.float32) + b1_ref[...]   # (T, tch)
    h = h * jax.nn.sigmoid(1.702 * h)                               # GELU2
    o_ref[...] += jnp.dot(h.astype(jnp.bfloat16), w2_ref[...],
                          preferred_element_type=jnp.float32)


def ln_mlp_branch(x, gamma, beta, w1, b1, w2, b2):
    B, T, C = x.shape
    Ch = w1.shape[0]
    tch = _pick_tile(Ch)                      # hidden-dim tile (<=1024, divides Ch)
    n_ch = Ch // tch
    w1t = w1.T.astype(jnp.bfloat16)           # (C, Ch)
    w2t = w2.T.astype(jnp.bfloat16)           # (Ch, C)
    g = gamma.reshape(1, C)
    bt = beta.reshape(1, C)
    b1r = b1.reshape(1, Ch)
    b2r = b2.reshape(1, C)
    return pl.pallas_call(
        _ln_mlp_kernel,
        out_shape=jax.ShapeDtypeStruct((B, T, C), jnp.float32),
        grid=(B, n_ch),
        in_specs=[
            pl.BlockSpec((None, T, C), lambda b, j: (b, 0, 0)),
            pl.BlockSpec((1, C), lambda b, j: (0, 0)),
            pl.BlockSpec((1, C), lambda b, j: (0, 0)),
            pl.BlockSpec((C, tch), lambda b, j: (0, j)),
            pl.BlockSpec((1, tch), lambda b, j: (0, j)),
            pl.BlockSpec((tch, C), lambda b, j: (j, 0)),
            pl.BlockSpec((1, C), lambda b, j: (0, 0)),
        ],
        out_specs=pl.BlockSpec((None, T, C), lambda b, j: (b, 0, 0)),
        scratch_shapes=[pltpu.VMEM((T, C), jnp.float32)],
        compiler_params=pltpu.CompilerParams(
            dimension_semantics=("parallel", "arbitrary")),
    )(x, g, bt, w1t, b1r, w2t, b2r)


# ----------------------------------------------------------------------------
# AdaLayerNorm scale/shift head (sinusoidal emb -> SiLU -> Linear); tiny, plain
# JAX glue.  num_steps / dim are static Python values.
# ----------------------------------------------------------------------------
def ada_scale_shift(timestep, w, b, num_steps, dim, rescale_steps=4000.0):
    # TODO(synk): the `timestep[0] >= diffusion_step` fallback in the reference
    # uses self.emb.weight, which SinusoidalPosEmb does not have; only the
    # in-range branch is implemented.
    t = timestep.astype(jnp.float32) / float(num_steps) * float(rescale_steps)
    half = dim // 2
    freqs = jnp.exp(jnp.arange(half, dtype=jnp.float32)
                    * -(math.log(10000.0) / (half - 1)))
    e = t[:, None] * freqs[None, :]
    emb = jnp.concatenate([jnp.sin(e), jnp.cos(e)], axis=-1)   # (B, dim)
    emb = jax.nn.silu(emb)
    emb = emb @ w.T + b                                        # (B, 2*dim)
    return emb[:, :dim], emb[:, dim:]                          # scale, shift


# ----------------------------------------------------------------------------
# Block forward (selfcross): three fused residual branches.
# ----------------------------------------------------------------------------
def block_forward(params, x, encoder_output, timestep, *, n_head, diffusion_step):
    C = x.shape[-1]

    # x = x + attn1(ln1(x, t))      (self-attention; att map not materialized)
    s1, sh1 = ada_scale_shift(timestep, params['ln1_w'], params['ln1_b'],
                              diffusion_step, C)
    x = self_attn_branch(x, s1, sh1, params['attn1'], n_head)

    # x = x + attn2(ln1_1(x, t), encoder_output)   -> att (head-averaged)
    s2, sh2 = ada_scale_shift(timestep, params['ln11_w'], params['ln11_b'],
                              diffusion_step, C)
    x, att = cross_attn_branch(x, encoder_output, s2, sh2, params['attn2'], n_head)

    # x = x + mlp(ln2(x))
    x = ln_mlp_branch(x, params['ln2_g'], params['ln2_b'],
                      params['mlp_w1'], params['mlp_b1'],
                      params['mlp_w2'], params['mlp_b2'])
    # TODO(synk): dropout layers are treated as eval-mode identity (no RNG).
    return x, att


# ----------------------------------------------------------------------------
# Deterministic parameter init (shapes per the module __init__).
# ----------------------------------------------------------------------------
def init_params(key, n_embd, condition_dim, mlp_hidden_times):
    ks = iter(jax.random.split(key, 32))

    def lin(out_dim, in_dim):
        w = jax.random.normal(next(ks), (out_dim, in_dim), jnp.float32) * 0.02
        b = jax.random.normal(next(ks), (out_dim,), jnp.float32) * 0.02
        return w, b

    C, Dk, Ch = n_embd, condition_dim, mlp_hidden_times * n_embd

    def attn_params(kv_dim):
        wk, bk = lin(C, kv_dim)
        wq, bq = lin(C, C)
        wv, bv = lin(C, kv_dim)
        wp, bp = lin(C, C)
        return dict(wq=wq, bq=bq, wk=wk, bk=bk, wv=wv, bv=bv, wp=wp, bp=bp)

    ln1_w, ln1_b = lin(2 * C, C)
    ln11_w, ln11_b = lin(2 * C, C)
    mlp_w1, mlp_b1 = lin(Ch, C)
    mlp_w2, mlp_b2 = lin(C, Ch)

    return dict(
        ln1_w=ln1_w, ln1_b=ln1_b,
        ln11_w=ln11_w, ln11_b=ln11_b,
        attn1=attn_params(C),
        attn2=attn_params(Dk),
        ln2_g=1.0 + 0.1 * jax.random.normal(next(ks), (C,), jnp.float32),
        ln2_b=0.1 * jax.random.normal(next(ks), (C,), jnp.float32),
        mlp_w1=mlp_w1, mlp_b1=mlp_b1, mlp_w2=mlp_w2, mlp_b2=mlp_b2,
    )


if __name__ == "__main__":
    B, T, C = 2, 16, 32           # batch, seq_len, n_embd
    T_E, D_COND = 8, 32           # condition_seq_len, condition_dim
    N_HEAD = 4
    DIFF_STEP = 100
    MLP_TIMES = 4

    key = jax.random.PRNGKey(0)
    kx, ke, kp = jax.random.split(key, 3)
    x = jax.random.normal(kx, (B, T, C), jnp.float32)
    encoder_output = jax.random.normal(ke, (B, T_E, D_COND), jnp.float32)
    timestep = jnp.array([3, 7], dtype=jnp.int32)   # < diffusion_step branch

    params = init_params(kp, C, D_COND, MLP_TIMES)

    fwd = jax.jit(functools.partial(block_forward,
                                    n_head=N_HEAD, diffusion_step=DIFF_STEP))
    y, att = fwd(params, x, encoder_output, timestep)
    jax.block_until_ready((y, att))

    assert y.shape == (B, T, C), y.shape
    assert att.shape == (B, T, T_E), att.shape
    assert bool(jnp.all(jnp.isfinite(y))) and bool(jnp.all(jnp.isfinite(att)))
    print("KERNEL_OK")
</pallas_src>

<mosaic_0001>
module attributes {stable_mosaic.version = 11 : i64} {
  func.func @_self_branch_kernel(%arg0: i32, %arg1: memref<1x16x32xf32, #tpu.memory_space<vmem>>, %arg2: memref<1x1x32xf32, #tpu.memory_space<vmem>>, %arg3: memref<1x1x32xf32, #tpu.memory_space<vmem>>, %arg4: memref<32x96xbf16, #tpu.memory_space<vmem>>, %arg5: memref<1x96xf32, #tpu.memory_space<vmem>>, %arg6: memref<32x32xbf16, #tpu.memory_space<vmem>>, %arg7: memref<1x32xf32, #tpu.memory_space<vmem>>, %arg8: memref<1x16x32xf32, #tpu.memory_space<vmem>>) attributes {dimension_semantics = [#tpu.dimension_semantics<parallel>], iteration_bounds = array<i64: 2>, scalar_prefetch = 0 : i64, scratch_operands = 0 : i64, tpu.core_type = #tpu.core_type<tc>, window_params = [{transform_indices = @transform_0, window_bounds = array<i64: 1, 16, 32>}, {transform_indices = @transform_1, window_bounds = array<i64: 1, 1, 32>}, {transform_indices = @transform_2, window_bounds = array<i64: 1, 1, 32>}, {pipeline_mode = #tpu.pipeline_mode<synchronous>, transform_indices = @transform_3, window_bounds = array<i64: 32, 96>}, {pipeline_mode = #tpu.pipeline_mode<synchronous>, transform_indices = @transform_4, window_bounds = array<i64: 1, 96>}, {pipeline_mode = #tpu.pipeline_mode<synchronous>, transform_indices = @transform_5, window_bounds = array<i64: 32, 32>}, {pipeline_mode = #tpu.pipeline_mode<synchronous>, transform_indices = @transform_6, window_bounds = array<i64: 1, 32>}, {transform_indices = @transform_7, window_bounds = array<i64: 1, 16, 32>}]} {
    %c0 = arith.constant 0 : index
    %c0_0 = arith.constant 0 : index
    %c0_1 = arith.constant 0 : index
    %0 = vector.load %arg1[%c0, %c0_0, %c0_1] : memref<1x16x32xf32, #tpu.memory_space<vmem>>, vector<1x16x32xf32>
    %1 = vector.shape_cast %0 : vector<1x16x32xf32> to vector<16x32xf32>
    %cst = arith.constant dense<0.000000e+00> : vector<16xf32>
    %2 = vector.multi_reduction <add>, %1, %cst [1] : vector<16x32xf32> to vector<16xf32>
    %3 = vector.shape_cast %2 : vector<16xf32> to vector<16x1xf32>
    %cst_2 = arith.constant 3.200000e+01 : f32
    %4 = vector.broadcast %cst_2 : f32 to vector<16x1xf32>
    %5 = arith.divf %3, %4 : vector<16x1xf32>
    %6 = vector.broadcast %5 : vector<16x1xf32> to vector<16x32xf32>
    %7 = arith.subf %1, %6 : vector<16x32xf32>
    %8 = arith.mulf %7, %7 : vector<16x32xf32>
    %cst_3 = arith.constant dense<0.000000e+00> : vector<16xf32>
    %9 = vector.multi_reduction <add>, %8, %cst_3 [1] : vector<16x32xf32> to vector<16xf32>
    %10 = vector.shape_cast %9 : vector<16xf32> to vector<16x1xf32>
    %cst_4 = arith.constant 3.200000e+01 : f32
    %11 = vector.broadcast %cst_4 : f32 to vector<16x1xf32>
    %12 = arith.divf %10, %11 : vector<16x1xf32>
    %13 = vector.broadcast %5 : vector<16x1xf32> to vector<16x32xf32>
    %14 = arith.subf %1, %13 : vector<16x32xf32>
    %cst_5 = arith.constant 9.99999974E-6 : f32
    %15 = vector.broadcast %cst_5 : f32 to vector<16x1xf32>
    %16 = arith.addf %12, %15 : vector<16x1xf32>
    %17 = math.rsqrt %16 : vector<16x1xf32>
    %18 = vector.broadcast %17 : vector<16x1xf32> to vector<16x32xf32>
    %19 = arith.mulf %14, %18 : vector<16x32xf32>
    %c0_6 = arith.constant 0 : index
    %c0_7 = arith.constant 0 : index
    %c0_8 = arith.constant 0 : index
    %20 = vector.load %arg2[%c0_6, %c0_7, %c0_8] : memref<1x1x32xf32, #tpu.memory_space<vmem>>, vector<1x1x32xf32>
    %21 = vector.shape_cast %20 : vector<1x1x32xf32> to vector<1x32xf32>
    %cst_9 = arith.constant 1.000000e+00 : f32
    %22 = vector.broadcast %cst_9 : f32 to vector<1x32xf32>
    %23 = arith.addf %22, %21 : vector<1x32xf32>
    %24 = vector.broadcast %23 : vector<1x32xf32> to vector<16x32xf32>
    %25 = arith.mulf %19, %24 : vector<16x32xf32>
    %c0_10 = arith.constant 0 : index
    %c0_11 = arith.constant 0 : index
    %c0_12 = arith.constant 0 : index
    %26 = vector.load %arg3[%c0_10, %c0_11, %c0_12] : memref<1x1x32xf32, #tpu.memory_space<vmem>>, vector<1x1x32xf32>
    %27 = vector.shape_cast %26 : vector<1x1x32xf32> to vector<1x32xf32>
    %28 = vector.broadcast %27 : vector<1x32xf32> to vector<16x32xf32>
    %29 = arith.addf %25, %28 : vector<16x32xf32>
    %30 = arith.truncf %29 : vector<16x32xf32> to vector<16x32xbf16>
    %c0_13 = arith.constant 0 : index
    %c0_14 = arith.constant 0 : index
    %31 = vector.load %arg4[%c0_13, %c0_14] : memref<32x96xbf16, #tpu.memory_space<vmem>>, vector<32x96xbf16>
    %cst_15 = arith.constant dense<0.000000e+00> : vector<16x96xf32>
    %32 = tpu.matmul %30, %31, %cst_15 {dimension_numbers = #tpu.dot_dimension_numbers<[1], [0], [0], [1], [0, 0, 1, 1], [], []>} : vector<16x32xbf16>, vector<32x96xbf16>, vector<16x96xf32> -> vector<16x96xf32>
    %c0_16 = arith.constant 0 : index
    %c0_17 = arith.constant 0 : index
    %33 = vector.load %arg5[%c0_16, %c0_17] : memref<1x96xf32, #tpu.memory_space<vmem>>, vector<1x96xf32>
    %34 = vector.broadcast %33 : vector<1x96xf32> to vector<16x96xf32>
    %35 = arith.addf %32, %34 : vector<16x96xf32>
    %36 = vector.extract_strided_slice %35 {offsets = [0, 0], sizes = [16, 32], strides = [1, 1]} : vector<16x96xf32> to vector<16x32xf32>
    %37 = vector.extract_strided_slice %35 {offsets = [0, 32], sizes = [16, 32], strides = [1, 1]} : vector<16x96xf32> to vector<16x32xf32>
    %38 = vector.extract_strided_slice %35 {offsets = [0, 64], sizes = [16, 32], strides = [1, 1]} : vector<16x96xf32> to vector<16x32xf32>
    %c0_18 = arith.constant 0 : index
    %c0_19 = arith.constant 0 : index
    %39 = vector.load %arg6[%c0_18, %c0_19] : memref<32x32xbf16, #tpu.memory_space<vmem>>, vector<32x32xbf16>
    %c0_20 = arith.constant 0 : index
    %c0_21 = arith.constant 0 : index
    %40 = vector.load %arg7[%c0_20, %c0_21] : memref<1x32xf32, #tpu.memory_space<vmem>>, vector<1x32xf32>
    %41 = vector.extract_strided_slice %36 {offsets = [0, 0], sizes = [16, 8], strides = [1, 1]} : vector<16x32xf32> to vector<16x8xf32>
    %cst_22 = arith.constant 0.353553385 : f32
    %42 = vector.broadcast %cst_22 : f32 to vector<16x8xf32>
    %43 = arith.mulf %41, %42 : vector<16x8xf32>
    %44 = arith.truncf %43 : vector<16x8xf32> to vector<16x8xbf16>
    %45 = vector.extract_strided_slice %37 {offsets = [0, 0], sizes = [16, 8], strides = [1, 1]} : vector<16x32xf32> to vector<16x8xf32>
    %46 = arith.truncf %45 : vector<16x8xf32> to vector<16x8xbf16>
    %47 = vector.extract_strided_slice %38 {offsets = [0, 0], sizes = [16, 8], strides = [1, 1]} : vector<16x32xf32> to vector<16x8xf32>
    %48 = arith.truncf %47 : vector<16x8xf32> to vector<16x8xbf16>
    %cst_23 = arith.constant dense<0.000000e+00> : vector<16x16xf32>
    %49 = tpu.matmul %44, %46, %cst_23 {dimension_numbers = #tpu.dot_dimension_numbers<[1], [1], [0], [0], [0, 0, 1, 0], [], []>} : vector<16x8xbf16>, vector<16x8xbf16>, vector<16x16xf32> -> vector<16x16xf32>
    %cst_24 = arith.constant dense<0xFF800000> : vector<16xf32>
    %50 = vector.multi_reduction <maximumf>, %49, %cst_24 [1] : vector<16x16xf32> to vector<16xf32>
    %51 = vector.shape_cast %50 : vector<16xf32> to vector<16x1xf32>
    %52 = vector.broadcast %51 : vector<16x1xf32> to vector<16x16xf32>
    %53 = arith.subf %49, %52 : vector<16x16xf32>
    %54 = math.exp %53 : vector<16x16xf32>
    %cst_25 = arith.constant dense<0.000000e+00> : vector<16xf32>
    %55 = vector.multi_reduction <add>, %54, %cst_25 [1] : vector<16x16xf32> to vector<16xf32>
    %56 = vector.shape_cast %55 : vector<16xf32> to vector<16x1xf32>
    %57 = tpu.reciprocal %56 {approx = true} : vector<16x1xf32> -> vector<16x1xf32>
    %58 = vector.broadcast %57 : vector<16x1xf32> to vector<16x16xf32>
    %59 = arith.mulf %54, %58 : vector<16x16xf32>
    %60 = arith.truncf %59 : vector<16x16xf32> to vector<16x16xbf16>
    %cst_26 = arith.constant dense<0.000000e+00> : vector<16x8xf32>
    %61 = tpu.matmul %60, %48, %cst_26 {dimension_numbers = #tpu.dot_dimension_numbers<[1], [0], [0], [1], [0, 0, 1, 1], [], []>} : vector<16x16xbf16>, vector<16x8xbf16>, vector<16x8xf32> -> vector<16x8xf32>
    %62 = vector.extract_strided_slice %36 {offsets = [0, 8], sizes = [16, 8], strides = [1, 1]} : vector<16x32xf32> to vector<16x8xf32>
    %cst_27 = arith.constant 0.353553385 : f32
    %63 = vector.broadcast %cst_27 : f32 to vector<16x8xf32>
    %64 = arith.mulf %62, %63 : vector<16x8xf32>
    %65 = arith.truncf %64 : vector<16x8xf32> to vector<16x8xbf16>
    %66 = vector.extract_strided_slice %37 {offsets = [0, 8], sizes = [16, 8], strides = [1, 1]} : vector<16x32xf32> to vector<16x8xf32>
    %67 = arith.truncf %66 : vector<16x8xf32> to vector<16x8xbf16>
    %68 = vector.extract_strided_slice %38 {offsets = [0, 8], sizes = [16, 8], strides = [1, 1]} : vector<16x32xf32> to vector<16x8xf32>
    %69 = arith.truncf %68 : vector<16x8xf32> to vector<16x8xbf16>
    %cst_28 = arith.constant dense<0.000000e+00> : vector<16x16xf32>
    %70 = tpu.matmul %65, %67, %cst_28 {dimension_numbers = #tpu.dot_dimension_numbers<[1], [1], [0], [0], [0, 0, 1, 0], [], []>} : vector<16x8xbf16>, vector<16x8xbf16>, vector<16x16xf32> -> vector<16x16xf32>
    %cst_29 = arith.constant dense<0xFF800000> : vector<16xf32>
    %71 = vector.multi_reduction <maximumf>, %70, %cst_29 [1] : vector<16x16xf32> to vector<16xf32>
    %72 = vector.shape_cast %71 : vector<16xf32> to vector<16x1xf32>
    %73 = vector.broadcast %72 : vector<16x1xf32> to vector<16x16xf32>
    %74 = arith.subf %70, %73 : vector<16x16xf32>
    %75 = math.exp %74 : vector<16x16xf32>
    %cst_30 = arith.constant dense<0.000000e+00> : vector<16xf32>
    %76 = vector.multi_reduction <add>, %75, %cst_30 [1] : vector<16x16xf32> to vector<16xf32>
    %77 = vector.shape_cast %76 : vector<16xf32> to vector<16x1xf32>
    %78 = tpu.reciprocal %77 {approx = true} : vector<16x1xf32> -> vector<16x1xf32>
    %79 = vector.broadcast %78 : vector<16x1xf32> to vector<16x16xf32>
    %80 = arith.mulf %75, %79 : vector<16x16xf32>
    %81 = arith.truncf %80 : vector<16x16xf32> to vector<16x16xbf16>
    %cst_31 = arith.constant dense<0.000000e+00> : vector<16x8xf32>
    %82 = tpu.matmul %81, %69, %cst_31 {dimension_numbers = #tpu.dot_dimension_numbers<[1], [0], [0], [1], [0, 0, 1, 1], [], []>} : vector<16x16xbf16>, vector<16x8xbf16>, vector<16x8xf32> -> vector<16x8xf32>
    %83 = vector.extract_strided_slice %36 {offsets = [0, 16], sizes = [16, 8], strides = [1, 1]} : vector<16x32xf32> to vector<16x8xf32>
    %cst_32 = arith.constant 0.353553385 : f32
    %84 = vector.broadcast %cst_32 : f32 to vector<16x8xf32>
    %85 = arith.mulf %83, %84 : vector<16x8xf32>
    %86 = arith.truncf %85 : vector<16x8xf32> to vector<16x8xbf16>
    %87 = vector.extract_strided_slice %37 {offsets = [0, 16], sizes = [16, 8], strides = [1, 1]} : vector<16x32xf32> to vector<16x8xf32>
    %88 = arith.truncf %87 : vector<16x8xf32> to vector<16x8xbf16>
    %89 = vector.extract_strided_slice %38 {offsets = [0, 16], sizes = [16, 8], strides = [1, 1]} : vector<16x32xf32> to vector<16x8xf32>
    %90 = arith.truncf %89 : vector<16x8xf32> to vector<16x8xbf16>
    %cst_33 = arith.constant dense<0.000000e+00> : vector<16x16xf32>
    %91 = tpu.matmul %86, %88, %cst_33 {dimension_numbers = #tpu.dot_dimension_numbers<[1], [1], [0], [0], [0, 0, 1, 0], [], []>} : vector<16x8xbf16>, vector<16x8xbf16>, vector<16x16xf32> -> vector<16x16xf32>
    %cst_34 = arith.constant dense<0xFF800000> : vector<16xf32>
    %92 = vector.multi_reduction <maximumf>, %91, %cst_34 [1] : vector<16x16xf32> to vector<16xf32>
    %93 = vector.shape_cast %92 : vector<16xf32> to vector<16x1xf32>
    %94 = vector.broadcast %93 : vector<16x1xf32> to vector<16x16xf32>
    %95 = arith.subf %91, %94 : vector<16x16xf32>
    %96 = math.exp %95 : vector<16x16xf32>
    %cst_35 = arith.constant dense<0.000000e+00> : vector<16xf32>
    %97 = vector.multi_reduction <add>, %96, %cst_35 [1] : vector<16x16xf32> to vector<16xf32>
    %98 = vector.shape_cast %97 : vector<16xf32> to vector<16x1xf32>
    %99 = tpu.reciprocal %98 {approx = true} : vector<16x1xf32> -> vector<16x1xf32>
    %100 = vector.broadcast %99 : vector<16x1xf32> to vector<16x16xf32>
    %101 = arith.mulf %96, %100 : vector<16x16xf32>
    %102 = arith.truncf %101 : vector<16x16xf32> to vector<16x16xbf16>
    %cst_36 = arith.constant dense<0.000000e+00> : vector<16x8xf32>
    %103 = tpu.matmul %102, %90, %cst_36 {dimension_numbers = #tpu.dot_dimension_numbers<[1], [0], [0], [1], [0, 0, 1, 1], [], []>} : vector<16x16xbf16>, vector<16x8xbf16>, vector<16x8xf32> -> vector<16x8xf32>
    %104 = vector.extract_strided_slice %36 {offsets = [0, 24], sizes = [16, 8], strides = [1, 1]} : vector<16x32xf32> to vector<16x8xf32>
    %cst_37 = arith.constant 0.353553385 : f32
    %105 = vector.broadcast %cst_37 : f32 to vector<16x8xf32>
    %106 = arith.mulf %104, %105 : vector<16x8xf32>
    %107 = arith.truncf %106 : vector<16x8xf32> to vector<16x8xbf16>
    %108 = vector.extract_strided_slice %37 {offsets = [0, 24], sizes = [16, 8], strides = [1, 1]} : vector<16x32xf32> to vector<16x8xf32>
    %109 = arith.truncf %108 : vector<16x8xf32> to vector<16x8xbf16>
    %110 = vector.extract_strided_slice %38 {offsets = [0, 24], sizes = [16, 8], strides = [1, 1]} : vector<16x32xf32> to vector<16x8xf32>
    %111 = arith.truncf %110 : vector<16x8xf32> to vector<16x8xbf16>
    %cst_38 = arith.constant dense<0.000000e+00> : vector<16x16xf32>
    %112 = tpu.matmul %107, %109, %cst_38 {dimension_numbers = #tpu.dot_dimension_numbers<[1], [1], [0], [0], [0, 0, 1, 0], [], []>} : vector<16x8xbf16>, vector<16x8xbf16>, vector<16x16xf32> -> vector<16x16xf32>
    %cst_39 = arith.constant dense<0xFF800000> : vector<16xf32>
    %113 = vector.multi_reduction <maximumf>, %112, %cst_39 [1] : vector<16x16xf32> to vector<16xf32>
    %114 = vector.shape_cast %113 : vector<16xf32> to vector<16x1xf32>
    %115 = vector.broadcast %114 : vector<16x1xf32> to vector<16x16xf32>
    %116 = arith.subf %112, %115 : vector<16x16xf32>
    %117 = math.exp %116 : vector<16x16xf32>
    %cst_40 = arith.constant dense<0.000000e+00> : vector<16xf32>
    %118 = vector.multi_reduction <add>, %117, %cst_40 [1] : vector<16x16xf32> to vector<16xf32>
    %119 = vector.shape_cast %118 : vector<16xf32> to vector<16x1xf32>
    %120 = tpu.reciprocal %119 {approx = true} : vector<16x1xf32> -> vector<16x1xf32>
    %121 = vector.broadcast %120 : vector<16x1xf32> to vector<16x16xf32>
    %122 = arith.mulf %117, %121 : vector<16x16xf32>
    %123 = arith.truncf %122 : vector<16x16xf32> to vector<16x16xbf16>
    %cst_41 = arith.constant dense<0.000000e+00> : vector<16x8xf32>
    %124 = tpu.matmul %123, %111, %cst_41 {dimension_numbers = #tpu.dot_dimension_numbers<[1], [0], [0], [1], [0, 0, 1, 1], [], []>} : vector<16x16xbf16>, vector<16x8xbf16>, vector<16x8xf32> -> vector<16x8xf32>
    %125 = tpu.concatenate %61, %82, %103, %124 in 1 : vector<16x8xf32>, vector<16x8xf32>, vector<16x8xf32>, vector<16x8xf32> -> vector<16x32xf32>
    %126 = arith.truncf %125 : vector<16x32xf32> to vector<16x32xbf16>
    %cst_42 = arith.constant dense<0.000000e+00> : vector<16x32xf32>
    %127 = tpu.matmul %126, %39, %cst_42 {dimension_numbers = #tpu.dot_dimension_numbers<[1], [0], [0], [1], [0, 0, 1, 1], [], []>} : vector<16x32xbf16>, vector<32x32xbf16>, vector<16x32xf32> -> vector<16x32xf32>
    %128 = vector.broadcast %40 : vector<1x32xf32> to vector<16x32xf32>
    %129 = arith.addf %127, %128 : vector<16x32xf32>
    %130 = arith.addf %1, %129 : vector<16x32xf32>
    %c0_43 = arith.constant 0 : index
    %c0_44 = arith.constant 0 : index
    %c0_45 = arith.constant 0 : index
    %131 = vector.load %arg8[%c0_43, %c0_44, %c0_45] : memref<1x16x32xf32, #tpu.memory_space<vmem>>, vector<1x16x32xf32>
    %132 = vector.shape_cast %131 : vector<1x16x32xf32> to vector<16x32xf32>
    %133 = vector.shape_cast %130 : vector<16x32xf32> to vector<1x16x32xf32>
    tpu.vector_store %arg8[%c0_43, %c0_44, %c0_45], %133 {strides = array<i32>} : memref<1x16x32xf32, #tpu.memory_space<vmem>>, vector<1x16x32xf32>,
    return
  }
  func.func @transform_0(%arg0: i32) -> (i32, i32, i32) {
    %c0_i32 = arith.constant 0 : i32
    %c0_i32_0 = arith.constant 0 : i32
    %c0_i32_1 = arith.constant 0 : i32
    return %arg0, %c0_i32, %c0_i32_0 : i32, i32, i32
  }
  func.func @transform_1(%arg0: i32) -> (i32, i32, i32) {
    %c0_i32 = arith.constant 0 : i32
    %c0_i32_0 = arith.constant 0 : i32
    %c0_i32_1 = arith.constant 0 : i32
    return %arg0, %c0_i32, %c0_i32_0 : i32, i32, i32
  }
  func.func @transform_2(%arg0: i32) -> (i32, i32, i32) {
    %c0_i32 = arith.constant 0 : i32
    %c0_i32_0 = arith.constant 0 : i32
    %c0_i32_1 = arith.constant 0 : i32
    return %arg0, %c0_i32, %c0_i32_0 : i32, i32, i32
  }
  func.func @transform_3(%arg0: i32) -> (i32, i32) {
    %c0_i32 = arith.constant 0 : i32
    %c0_i32_0 = arith.constant 0 : i32
    %c0_i32_1 = arith.constant 0 : i32
    return %c0_i32, %c0_i32_0 : i32, i32
  }
  func.func @transform_4(%arg0: i32) -> (i32, i32) {
    %c0_i32 = arith.constant 0 : i32
    %c0_i32_0 = arith.constant 0 : i32
    %c0_i32_1 = arith.constant 0 : i32
    return %c0_i32, %c0_i32_0 : i32, i32
  }
  func.func @transform_5(%arg0: i32) -> (i32, i32) {
    %c0_i32 = arith.constant 0 : i32
    %c0_i32_0 = arith.constant 0 : i32
    %c0_i32_1 = arith.constant 0 : i32
    return %c0_i32, %c0_i32_0 : i32, i32
  }
  func.func @transform_6(%arg0: i32) -> (i32, i32) {
    %c0_i32 = arith.constant 0 : i32
    %c0_i32_0 = arith.constant 0 : i32
    %c0_i32_1 = arith.constant 0 : i32
    return %c0_i32, %c0_i32_0 : i32, i32
  }
  func.func @transform_7(%arg0: i32) -> (i32, i32, i32) {
    %c0_i32 = arith.constant 0 : i32
    %c0_i32_0 = arith.constant 0 : i32
    %c0_i32_1 = arith.constant 0 : i32
    return %arg0, %c0_i32, %c0_i32_0 : i32, i32, i32
  }
}

module attributes {stable_mosaic.version = 11 : i64} {
  func.func @_cross_branch_kernel(%arg0: i32, %arg1: memref<1x16x32xf32, #tpu.memory_space<vmem>>, %arg2: memref<1x8x32xf32, #tpu.memory_space<vmem>>, %arg3: memref<1x1x32xf32, #tpu.memory_space<vmem>>, %arg4: memref<1x1x32xf32, #tpu.memory_space<vmem>>, %arg5: memref<32x32xbf16, #tpu.memory_space<vmem>>, %arg6: memref<1x32xf32, #tpu.memory_space<vmem>>, %arg7: memref<32x64xbf16, #tpu.memory_space<vmem>>, %arg8: memref<1x64xf32, #tpu.memory_space<vmem>>, %arg9: memref<32x32xbf16, #tpu.memory_space<vmem>>, %arg10: memref<1x32xf32, #tpu.memory_space<vmem>>, %arg11: memref<1x16x32xf32, #tpu.memory_space<vmem>>, %arg12: memref<1x16x8xf32, #tpu.memory_space<vmem>>) attributes {dimension_semantics = [#tpu.dimension_semantics<parallel>], iteration_bounds = array<i64: 2>, scalar_prefetch = 0 : i64, scratch_operands = 0 : i64, tpu.core_type = #tpu.core_type<tc>, window_params = [{transform_indices = @transform_0, window_bounds = array<i64: 1, 16, 32>}, {transform_indices = @transform_1, window_bounds = array<i64: 1, 8, 32>}, {transform_indices = @transform_2, window_bounds = array<i64: 1, 1, 32>}, {transform_indices = @transform_3, window_bounds = array<i64: 1, 1, 32>}, {pipeline_mode = #tpu.pipeline_mode<synchronous>, transform_indices = @transform_4, window_bounds = array<i64: 32, 32>}, {pipeline_mode = #tpu.pipeline_mode<synchronous>, transform_indices = @transform_5, window_bounds = array<i64: 1, 32>}, {pipeline_mode = #tpu.pipeline_mode<synchronous>, transform_indices = @transform_6, window_bounds = array<i64: 32, 64>}, {pipeline_mode = #tpu.pipeline_mode<synchronous>, transform_indices = @transform_7, window_bounds = array<i64: 1, 64>}, {pipeline_mode = #tpu.pipeline_mode<synchronous>, transform_indices = @transform_8, window_bounds = array<i64: 32, 32>}, {pipeline_mode = #tpu.pipeline_mode<synchronous>, transform_indices = @transform_9, window_bounds = array<i64: 1, 32>}, {transform_indices = @transform_10, window_bounds = array<i64: 1, 16, 32>}, {transform_indices = @transform_11, window_bounds = array<i64: 1, 16, 8>}]} {
    %c0 = arith.constant 0 : index
    %c0_0 = arith.constant 0 : index
    %c0_1 = arith.constant 0 : index
    %0 = vector.load %arg1[%c0, %c0_0, %c0_1] : memref<1x16x32xf32, #tpu.memory_space<vmem>>, vector<1x16x32xf32>
    %1 = vector.shape_cast %0 : vector<1x16x32xf32> to vector<16x32xf32>
    %cst = arith.constant dense<0.000000e+00> : vector<16xf32>
    %2 = vector.multi_reduction <add>, %1, %cst [1] : vector<16x32xf32> to vector<16xf32>
    %3 = vector.shape_cast %2 : vector<16xf32> to vector<16x1xf32>
    %cst_2 = arith.constant 3.200000e+01 : f32
    %4 = vector.broadcast %cst_2 : f32 to vector<16x1xf32>
    %5 = arith.divf %3, %4 : vector<16x1xf32>
    %6 = vector.broadcast %5 : vector<16x1xf32> to vector<16x32xf32>
    %7 = arith.subf %1, %6 : vector<16x32xf32>
    %8 = arith.mulf %7, %7 : vector<16x32xf32>
    %cst_3 = arith.constant dense<0.000000e+00> : vector<16xf32>
    %9 = vector.multi_reduction <add>, %8, %cst_3 [1] : vector<16x32xf32> to vector<16xf32>
    %10 = vector.shape_cast %9 : vector<16xf32> to vector<16x1xf32>
    %cst_4 = arith.constant 3.200000e+01 : f32
    %11 = vector.broadcast %cst_4 : f32 to vector<16x1xf32>
    %12 = arith.divf %10, %11 : vector<16x1xf32>
    %13 = vector.broadcast %5 : vector<16x1xf32> to vector<16x32xf32>
    %14 = arith.subf %1, %13 : vector<16x32xf32>
    %cst_5 = arith.constant 9.99999974E-6 : f32
    %15 = vector.broadcast %cst_5 : f32 to vector<16x1xf32>
    %16 = arith.addf %12, %15 : vector<16x1xf32>
    %17 = math.rsqrt %16 : vector<16x1xf32>
    %18 = vector.broadcast %17 : vector<16x1xf32> to vector<16x32xf32>
    %19 = arith.mulf %14, %18 : vector<16x32xf32>
    %c0_6 = arith.constant 0 : index
    %c0_7 = arith.constant 0 : index
    %c0_8 = arith.constant 0 : index
    %20 = vector.load %arg3[%c0_6, %c0_7, %c0_8] : memref<1x1x32xf32, #tpu.memory_space<vmem>>, vector<1x1x32xf32>
    %21 = vector.shape_cast %20 : vector<1x1x32xf32> to vector<1x32xf32>
    %cst_9 = arith.constant 1.000000e+00 : f32
    %22 = vector.broadcast %cst_9 : f32 to vector<1x32xf32>
    %23 = arith.addf %22, %21 : vector<1x32xf32>
    %24 = vector.broadcast %23 : vector<1x32xf32> to vector<16x32xf32>
    %25 = arith.mulf %19, %24 : vector<16x32xf32>
    %c0_10 = arith.constant 0 : index
    %c0_11 = arith.constant 0 : index
    %c0_12 = arith.constant 0 : index
    %26 = vector.load %arg4[%c0_10, %c0_11, %c0_12] : memref<1x1x32xf32, #tpu.memory_space<vmem>>, vector<1x1x32xf32>
    %27 = vector.shape_cast %26 : vector<1x1x32xf32> to vector<1x32xf32>
    %28 = vector.broadcast %27 : vector<1x32xf32> to vector<16x32xf32>
    %29 = arith.addf %25, %28 : vector<16x32xf32>
    %30 = arith.truncf %29 : vector<16x32xf32> to vector<16x32xbf16>
    %c0_13 = arith.constant 0 : index
    %c0_14 = arith.constant 0 : index
    %31 = vector.load %arg5[%c0_13, %c0_14] : memref<32x32xbf16, #tpu.memory_space<vmem>>, vector<32x32xbf16>
    %cst_15 = arith.constant dense<0.000000e+00> : vector<16x32xf32>
    %32 = tpu.matmul %30, %31, %cst_15 {dimension_numbers = #tpu.dot_dimension_numbers<[1], [0], [0], [1], [0, 0, 1, 1], [], []>} : vector<16x32xbf16>, vector<32x32xbf16>, vector<16x32xf32> -> vector<16x32xf32>
    %c0_16 = arith.constant 0 : index
    %c0_17 = arith.constant 0 : index
    %33 = vector.load %arg6[%c0_16, %c0_17] : memref<1x32xf32, #tpu.memory_space<vmem>>, vector<1x32xf32>
    %34 = vector.broadcast %33 : vector<1x32xf32> to vector<16x32xf32>
    %35 = arith.addf %32, %34 : vector<16x32xf32>
    %c0_18 = arith.constant 0 : index
    %c0_19 = arith.constant 0 : index
    %c0_20 = arith.constant 0 : index
    %36 = vector.load %arg2[%c0_18, %c0_19, %c0_20] : memref<1x8x32xf32, #tpu.memory_space<vmem>>, vector<1x8x32xf32>
    %37 = vector.shape_cast %36 : vector<1x8x32xf32> to vector<8x32xf32>
    %38 = arith.truncf %37 : vector<8x32xf32> to vector<8x32xbf16>
    %c0_21 = arith.constant 0 : index
    %c0_22 = arith.constant 0 : index
    %39 = vector.load %arg7[%c0_21, %c0_22] : memref<32x64xbf16, #tpu.memory_space<vmem>>, vector<32x64xbf16>
    %cst_23 = arith.constant dense<0.000000e+00> : vector<8x64xf32>
    %40 = tpu.matmul %38, %39, %cst_23 {dimension_numbers = #tpu.dot_dimension_numbers<[1], [0], [0], [1], [0, 0, 1, 1], [], []>} : vector<8x32xbf16>, vector<32x64xbf16>, vector<8x64xf32> -> vector<8x64xf32>
    %c0_24 = arith.constant 0 : index
    %c0_25 = arith.constant 0 : index
    %41 = vector.load %arg8[%c0_24, %c0_25] : memref<1x64xf32, #tpu.memory_space<vmem>>, vector<1x64xf32>
    %42 = vector.broadcast %41 : vector<1x64xf32> to vector<8x64xf32>
    %43 = arith.addf %40, %42 : vector<8x64xf32>
    %44 = vector.extract_strided_slice %43 {offsets = [0, 0], sizes = [8, 32], strides = [1, 1]} : vector<8x64xf32> to vector<8x32xf32>
    %45 = vector.extract_strided_slice %43 {offsets = [0, 32], sizes = [8, 32], strides = [1, 1]} : vector<8x64xf32> to vector<8x32xf32>
    %c0_26 = arith.constant 0 : index
    %c0_27 = arith.constant 0 : index
    %46 = vector.load %arg9[%c0_26, %c0_27] : memref<32x32xbf16, #tpu.memory_space<vmem>>, vector<32x32xbf16>
    %c0_28 = arith.constant 0 : index
    %c0_29 = arith.constant 0 : index
    %47 = vector.load %arg10[%c0_28, %c0_29] : memref<1x32xf32, #tpu.memory_space<vmem>>, vector<1x32xf32>
    %cst_30 = arith.constant 0.000000e+00 : f32
    %48 = vector.broadcast %cst_30 : f32 to vector<16x8xf32>
    %49 = vector.extract_strided_slice %35 {offsets = [0, 0], sizes = [16, 8], strides = [1, 1]} : vector<16x32xf32> to vector<16x8xf32>
    %cst_31 = arith.constant 0.353553385 : f32
    %50 = vector.broadcast %cst_31 : f32 to vector<16x8xf32>
    %51 = arith.mulf %49, %50 : vector<16x8xf32>
    %52 = arith.truncf %51 : vector<16x8xf32> to vector<16x8xbf16>
    %53 = vector.extract_strided_slice %44 {offsets = [0, 0], sizes = [8, 8], strides = [1, 1]} : vector<8x32xf32> to vector<8x8xf32>
    %54 = arith.truncf %53 : vector<8x8xf32> to vector<8x8xbf16>
    %55 = vector.extract_strided_slice %45 {offsets = [0, 0], sizes = [8, 8], strides = [1, 1]} : vector<8x32xf32> to vector<8x8xf32>
    %56 = arith.truncf %55 : vector<8x8xf32> to vector<8x8xbf16>
    %cst_32 = arith.constant dense<0.000000e+00> : vector<16x8xf32>
    %57 = tpu.matmul %52, %54, %cst_32 {dimension_numbers = #tpu.dot_dimension_numbers<[1], [1], [0], [0], [0, 0, 1, 0], [], []>} : vector<16x8xbf16>, vector<8x8xbf16>, vector<16x8xf32> -> vector<16x8xf32>
    %cst_33 = arith.constant dense<0xFF800000> : vector<16xf32>
    %58 = vector.multi_reduction <maximumf>, %57, %cst_33 [1] : vector<16x8xf32> to vector<16xf32>
    %59 = vector.shape_cast %58 : vector<16xf32> to vector<16x1xf32>
    %60 = vector.broadcast %59 : vector<16x1xf32> to vector<16x8xf32>
    %61 = arith.subf %57, %60 : vector<16x8xf32>
    %62 = math.exp %61 : vector<16x8xf32>
    %cst_34 = arith.constant dense<0.000000e+00> : vector<16xf32>
    %63 = vector.multi_reduction <add>, %62, %cst_34 [1] : vector<16x8xf32> to vector<16xf32>
    %64 = vector.shape_cast %63 : vector<16xf32> to vector<16x1xf32>
    %65 = tpu.reciprocal %64 {approx = true} : vector<16x1xf32> -> vector<16x1xf32>
    %66 = vector.broadcast %65 : vector<16x1xf32> to vector<16x8xf32>
    %67 = arith.mulf %62, %66 : vector<16x8xf32>
    %68 = arith.addf %48, %67 : vector<16x8xf32>
    %69 = arith.truncf %67 : vector<16x8xf32> to vector<16x8xbf16>
    %cst_35 = arith.constant dense<0.000000e+00> : vector<16x8xf32>
    %70 = tpu.matmul %69, %56, %cst_35 {dimension_numbers = #tpu.dot_dimension_numbers<[1], [0], [0], [1], [0, 0, 1, 1], [], []>} : vector<16x8xbf16>, vector<8x8xbf16>, vector<16x8xf32> -> vector<16x8xf32>
    %71 = vector.extract_strided_slice %35 {offsets = [0, 8], sizes = [16, 8], strides = [1, 1]} : vector<16x32xf32> to vector<16x8xf32>
    %cst_36 = arith.constant 0.353553385 : f32
    %72 = vector.broadcast %cst_36 : f32 to vector<16x8xf32>
    %73 = arith.mulf %71, %72 : vector<16x8xf32>
    %74 = arith.truncf %73 : vector<16x8xf32> to vector<16x8xbf16>
    %75 = vector.extract_strided_slice %44 {offsets = [0, 8], sizes = [8, 8], strides = [1, 1]} : vector<8x32xf32> to vector<8x8xf32>
    %76 = arith.truncf %75 : vector<8x8xf32> to vector<8x8xbf16>
    %77 = vector.extract_strided_slice %45 {offsets = [0, 8], sizes = [8, 8], strides = [1, 1]} : vector<8x32xf32> to vector<8x8xf32>
    %78 = arith.truncf %77 : vector<8x8xf32> to vector<8x8xbf16>
    %cst_37 = arith.constant dense<0.000000e+00> : vector<16x8xf32>
    %79 = tpu.matmul %74, %76, %cst_37 {dimension_numbers = #tpu.dot_dimension_numbers<[1], [1], [0], [0], [0, 0, 1, 0], [], []>} : vector<16x8xbf16>, vector<8x8xbf16>, vector<16x8xf32> -> vector<16x8xf32>
    %cst_38 = arith.constant dense<0xFF800000> : vector<16xf32>
    %80 = vector.multi_reduction <maximumf>, %79, %cst_38 [1] : vector<16x8xf32> to vector<16xf32>
    %81 = vector.shape_cast %80 : vector<16xf32> to vector<16x1xf32>
    %82 = vector.broadcast %81 : vector<16x1xf32> to vector<16x8xf32>
    %83 = arith.subf %79, %82 : vector<16x8xf32>
    %84 = math.exp %83 : vector<16x8xf32>
    %cst_39 = arith.constant dense<0.000000e+00> : vector<16xf32>
    %85 = vector.multi_reduction <add>, %84, %cst_39 [1] : vector<16x8xf32> to vector<16xf32>
    %86 = vector.shape_cast %85 : vector<16xf32> to vector<16x1xf32>
    %87 = tpu.reciprocal %86 {approx = true} : vector<16x1xf32> -> vector<16x1xf32>
    %88 = vector.broadcast %87 : vector<16x1xf32> to vector<16x8xf32>
    %89 = arith.mulf %84, %88 : vector<16x8xf32>
    %90 = arith.addf %68, %89 : vector<16x8xf32>
    %91 = arith.truncf %89 : vector<16x8xf32> to vector<16x8xbf16>
    %cst_40 = arith.constant dense<0.000000e+00> : vector<16x8xf32>
    %92 = tpu.matmul %91, %78, %cst_40 {dimension_numbers = #tpu.dot_dimension_numbers<[1], [0], [0], [1], [0, 0, 1, 1], [], []>} : vector<16x8xbf16>, vector<8x8xbf16>, vector<16x8xf32> -> vector<16x8xf32>
    %93 = vector.extract_strided_slice %35 {offsets = [0, 16], sizes = [16, 8], strides = [1, 1]} : vector<16x32xf32> to vector<16x8xf32>
    %cst_41 = arith.constant 0.353553385 : f32
    %94 = vector.broadcast %cst_41 : f32 to vector<16x8xf32>
    %95 = arith.mulf %93, %94 : vector<16x8xf32>
    %96 = arith.truncf %95 : vector<16x8xf32> to vector<16x8xbf16>
    %97 = vector.extract_strided_slice %44 {offsets = [0, 16], sizes = [8, 8], strides = [1, 1]} : vector<8x32xf32> to vector<8x8xf32>
    %98 = arith.truncf %97 : vector<8x8xf32> to vector<8x8xbf16>
    %99 = vector.extract_strided_slice %45 {offsets = [0, 16], sizes = [8, 8], strides = [1, 1]} : vector<8x32xf32> to vector<8x8xf32>
    %100 = arith.truncf %99 : vector<8x8xf32> to vector<8x8xbf16>
    %cst_42 = arith.constant dense<0.000000e+00> : vector<16x8xf32>
    %101 = tpu.matmul %96, %98, %cst_42 {dimension_numbers = #tpu.dot_dimension_numbers<[1], [1], [0], [0], [0, 0, 1, 0], [], []>} : vector<16x8xbf16>, vector<8x8xbf16>, vector<16x8xf32> -> vector<16x8xf32>
    %cst_43 = arith.constant dense<0xFF800000> : vector<16xf32>
    %102 = vector.multi_reduction <maximumf>, %101, %cst_43 [1] : vector<16x8xf32> to vector<16xf32>
    %103 = vector.shape_cast %102 : vector<16xf32> to vector<16x1xf32>
    %104 = vector.broadcast %103 : vector<16x1xf32> to vector<16x8xf32>
    %105 = arith.subf %101, %104 : vector<16x8xf32>
    %106 = math.exp %105 : vector<16x8xf32>
    %cst_44 = arith.constant dense<0.000000e+00> : vector<16xf32>
    %107 = vector.multi_reduction <add>, %106, %cst_44 [1] : vector<16x8xf32> to vector<16xf32>
    %108 = vector.shape_cast %107 : vector<16xf32> to vector<16x1xf32>
    %109 = tpu.reciprocal %108 {approx = true} : vector<16x1xf32> -> vector<16x1xf32>
    %110 = vector.broadcast %109 : vector<16x1xf32> to vector<16x8xf32>
    %111 = arith.mulf %106, %110 : vector<16x8xf32>
    %112 = arith.addf %90, %111 : vector<16x8xf32>
    %113 = arith.truncf %111 : vector<16x8xf32> to vector<16x8xbf16>
    %cst_45 = arith.constant dense<0.000000e+00> : vector<16x8xf32>
    %114 = tpu.matmul %113, %100, %cst_45 {dimension_numbers = #tpu.dot_dimension_numbers<[1], [0], [0], [1], [0, 0, 1, 1], [], []>} : vector<16x8xbf16>, vector<8x8xbf16>, vector<16x8xf32> -> vector<16x8xf32>
    %115 = vector.extract_strided_slice %35 {offsets = [0, 24], sizes = [16, 8], strides = [1, 1]} : vector<16x32xf32> to vector<16x8xf32>
    %cst_46 = arith.constant 0.353553385 : f32
    %116 = vector.broadcast %cst_46 : f32 to vector<16x8xf32>
    %117 = arith.mulf %115, %116 : vector<16x8xf32>
    %118 = arith.truncf %117 : vector<16x8xf32> to vector<16x8xbf16>
    %119 = vector.extract_strided_slice %44 {offsets = [0, 24], sizes = [8, 8], strides = [1, 1]} : vector<8x32xf32> to vector<8x8xf32>
    %120 = arith.truncf %119 : vector<8x8xf32> to vector<8x8xbf16>
    %121 = vector.extract_strided_slice %45 {offsets = [0, 24], sizes = [8, 8], strides = [1, 1]} : vector<8x32xf32> to vector<8x8xf32>
    %122 = arith.truncf %121 : vector<8x8xf32> to vector<8x8xbf16>
    %cst_47 = arith.constant dense<0.000000e+00> : vector<16x8xf32>
    %123 = tpu.matmul %118, %120, %cst_47 {dimension_numbers = #tpu.dot_dimension_numbers<[1], [1], [0], [0], [0, 0, 1, 0], [], []>} : vector<16x8xbf16>, vector<8x8xbf16>, vector<16x8xf32> -> vector<16x8xf32>
    %cst_48 = arith.constant dense<0xFF800000> : vector<16xf32>
    %124 = vector.multi_reduction <maximumf>, %123, %cst_48 [1] : vector<16x8xf32> to vector<16xf32>
    %125 = vector.shape_cast %124 : vector<16xf32> to vector<16x1xf32>
    %126 = vector.broadcast %125 : vector<16x1xf32> to vector<16x8xf32>
    %127 = arith.subf %123, %126 : vector<16x8xf32>
    %128 = math.exp %127 : vector<16x8xf32>
    %cst_49 = arith.constant dense<0.000000e+00> : vector<16xf32>
    %129 = vector.multi_reduction <add>, %128, %cst_49 [1] : vector<16x8xf32> to vector<16xf32>
    %130 = vector.shape_cast %129 : vector<16xf32> to vector<16x1xf32>
    %131 = tpu.reciprocal %130 {approx = true} : vector<16x1xf32> -> vector<16x1xf32>
    %132 = vector.broadcast %131 : vector<16x1xf32> to vector<16x8xf32>
    %133 = arith.mulf %128, %132 : vector<16x8xf32>
    %134 = arith.addf %112, %133 : vector<16x8xf32>
    %135 = arith.truncf %133 : vector<16x8xf32> to vector<16x8xbf16>
    %cst_50 = arith.constant dense<0.000000e+00> : vector<16x8xf32>
    %136 = tpu.matmul %135, %122, %cst_50 {dimension_numbers = #tpu.dot_dimension_numbers<[1], [0], [0], [1], [0, 0, 1, 1], [], []>} : vector<16x8xbf16>, vector<8x8xbf16>, vector<16x8xf32> -> vector<16x8xf32>
    %137 = tpu.concatenate %70, %92, %114, %136 in 1 : vector<16x8xf32>, vector<16x8xf32>, vector<16x8xf32>, vector<16x8xf32> -> vector<16x32xf32>
    %138 = arith.truncf %137 : vector<16x32xf32> to vector<16x32xbf16>
    %cst_51 = arith.constant dense<0.000000e+00> : vector<16x32xf32>
    %139 = tpu.matmul %138, %46, %cst_51 {dimension_numbers = #tpu.dot_dimension_numbers<[1], [0], [0], [1], [0, 0, 1, 1], [], []>} : vector<16x32xbf16>, vector<32x32xbf16>, vector<16x32xf32> -> vector<16x32xf32>
    %140 = vector.broadcast %47 : vector<1x32xf32> to vector<16x32xf32>
    %141 = arith.addf %139, %140 : vector<16x32xf32>
    %cst_52 = arith.constant 2.500000e-01 : f32
    %142 = vector.broadcast %cst_52 : f32 to vector<16x8xf32>
    %143 = arith.mulf %134, %142 : vector<16x8xf32>
    %144 = arith.addf %1, %141 : vector<16x32xf32>
    %c0_53 = arith.constant 0 : index
    %c0_54 = arith.constant 0 : index
    %c0_55 = arith.constant 0 : index
    %145 = vector.load %arg11[%c0_53, %c0_54, %c0_55] : memref<1x16x32xf32, #tpu.memory_space<vmem>>, vector<1x16x32xf32>
    %146 = vector.shape_cast %145 : vector<1x16x32xf32> to vector<16x32xf32>
    %147 = vector.shape_cast %144 : vector<16x32xf32> to vector<1x16x32xf32>
    tpu.vector_store %arg11[%c0_53, %c0_54, %c0_55], %147 {strides = array<i32>} : memref<1x16x32xf32, #tpu.memory_space<vmem>>, vector<1x16x32xf32>,
    %c0_56 = arith.constant 0 : index
    %c0_57 = arith.constant 0 : index
    %c0_58 = arith.constant 0 : index
    %148 = vector.load %arg12[%c0_56, %c0_57, %c0_58] : memref<1x16x8xf32, #tpu.memory_space<vmem>>, vector<1x16x8xf32>
    %149 = vector.shape_cast %148 : vector<1x16x8xf32> to vector<16x8xf32>
    %150 = vector.shape_cast %143 : vector<16x8xf32> to vector<1x16x8xf32>
    tpu.vector_store %arg12[%c0_56, %c0_57, %c0_58], %150 {strides = array<i32>} : memref<1x16x8xf32, #tpu.memory_space<vmem>>, vector<1x16x8xf32>,
    return
  }
  func.func @transform_0(%arg0: i32) -> (i32, i32, i32) {
    %c0_i32 = arith.constant 0 : i32
    %c0_i32_0 = arith.constant 0 : i32
    %c0_i32_1 = arith.constant 0 : i32
    return %arg0, %c0_i32, %c0_i32_0 : i32, i32, i32
  }
  func.func @transform_1(%arg0: i32) -> (i32, i32, i32) {
    %c0_i32 = arith.constant 0 : i32
    %c0_i32_0 = arith.constant 0 : i32
    %c0_i32_1 = arith.constant 0 : i32
    return %arg0, %c0_i32, %c0_i32_0 : i32, i32, i32
  }
  func.func @transform_2(%arg0: i32) -> (i32, i32, i32) {
    %c0_i32 = arith.constant 0 : i32
    %c0_i32_0 = arith.constant 0 : i32
    %c0_i32_1 = arith.constant 0 : i32
    return %arg0, %c0_i32, %c0_i32_0 : i32, i32, i32
  }
  func.func @transform_3(%arg0: i32) -> (i32, i32, i32) {
    %c0_i32 = arith.constant 0 : i32
    %c0_i32_0 = arith.constant 0 : i32
    %c0_i32_1 = arith.constant 0 : i32
    return %arg0, %c0_i32, %c0_i32_0 : i32, i32, i32
  }
  func.func @transform_4(%arg0: i32) -> (i32, i32) {
    %c0_i32 = arith.constant 0 : i32
    %c0_i32_0 = arith.constant 0 : i32
    %c0_i32_1 = arith.constant 0 : i32
    return %c0_i32, %c0_i32_0 : i32, i32
  }
  func.func @transform_5(%arg0: i32) -> (i32, i32) {
    %c0_i32 = arith.constant 0 : i32
    %c0_i32_0 = arith.constant 0 : i32
    %c0_i32_1 = arith.constant 0 : i32
    return %c0_i32, %c0_i32_0 : i32, i32
  }
  func.func @transform_6(%arg0: i32) -> (i32, i32) {
    %c0_i32 = arith.constant 0 : i32
    %c0_i32_0 = arith.constant 0 : i32
    %c0_i32_1 = arith.constant 0 : i32
    return %c0_i32, %c0_i32_0 : i32, i32
  }
  func.func @transform_7(%arg0: i32) -> (i32, i32) {
    %c0_i32 = arith.constant 0 : i32
    %c0_i32_0 = arith.constant 0 : i32
    %c0_i32_1 = arith.constant 0 : i32
    return %c0_i32, %c0_i32_0 : i32, i32
  }
  func.func @transform_8(%arg0: i32) -> (i32, i32) {
    %c0_i32 = arith.constant 0 : i32
    %c0_i32_0 = arith.constant 0 : i32
    %c0_i32_1 = arith.constant 0 : i32
    return %c0_i32, %c0_i32_0 : i32, i32
  }
  func.func @transform_9(%arg0: i32) -> (i32, i32) {
    %c0_i32 = arith.constant 0 : i32
    %c0_i32_0 = arith.constant 0 : i32
    %c0_i32_1 = arith.constant 0 : i32
    return %c0_i32, %c0_i32_0 : i32, i32
  }
  func.func @transform_10(%arg0: i32) -> (i32, i32, i32) {
    %c0_i32 = arith.constant 0 : i32
    %c0_i32_0 = arith.constant 0 : i32
    %c0_i32_1 = arith.constant 0 : i32
    return %arg0, %c0_i32, %c0_i32_0 : i32, i32, i32
  }
  func.func @transform_11(%arg0: i32) -> (i32, i32, i32) {
    %c0_i32 = arith.constant 0 : i32
    %c0_i32_0 = arith.constant 0 : i32
    %c0_i32_1 = arith.constant 0 : i32
    return %arg0, %c0_i32, %c0_i32_0 : i32, i32, i32
  }
}

module attributes {stable_mosaic.version = 11 : i64} {
  func.func @_ln_mlp_kernel(%arg0: i32, %arg1: i32, %arg2: memref<1x16x32xf32, #tpu.memory_space<vmem>>, %arg3: memref<1x32xf32, #tpu.memory_space<vmem>>, %arg4: memref<1x32xf32, #tpu.memory_space<vmem>>, %arg5: memref<32x128xbf16, #tpu.memory_space<vmem>>, %arg6: memref<1x128xf32, #tpu.memory_space<vmem>>, %arg7: memref<128x32xbf16, #tpu.memory_space<vmem>>, %arg8: memref<1x32xf32, #tpu.memory_space<vmem>>, %arg9: memref<1x16x32xf32, #tpu.memory_space<vmem>>, %arg10: memref<16x32xf32, #tpu.memory_space<vmem>>) attributes {dimension_semantics = [#tpu.dimension_semantics<parallel>, #tpu.dimension_semantics<arbitrary>], iteration_bounds = array<i64: 2, 1>, scalar_prefetch = 0 : i64, scratch_operands = 1 : i64, tpu.core_type = #tpu.core_type<tc>, window_params = [{transform_indices = @transform_0, window_bounds = array<i64: 1, 16, 32>}, {pipeline_mode = #tpu.pipeline_mode<synchronous>, transform_indices = @transform_1, window_bounds = array<i64: 1, 32>}, {pipeline_mode = #tpu.pipeline_mode<synchronous>, transform_indices = @transform_2, window_bounds = array<i64: 1, 32>}, {transform_indices = @transform_3, window_bounds = array<i64: 32, 128>}, {transform_indices = @transform_4, window_bounds = array<i64: 1, 128>}, {transform_indices = @transform_5, window_bounds = array<i64: 128, 32>}, {pipeline_mode = #tpu.pipeline_mode<synchronous>, transform_indices = @transform_6, window_bounds = array<i64: 1, 32>}, {transform_indices = @transform_7, window_bounds = array<i64: 1, 16, 32>}]} {
    %c0_i32 = arith.constant 0 : i32
    %0 = arith.cmpi eq, %arg1, %c0_i32 : i32
    %1 = arith.extui %0 : i1 to i32
    %c0_i32_0 = arith.constant 0 : i32
    %2 = arith.cmpi ne, %1, %c0_i32_0 : i32
    scf.if %2 {
      %c0_17 = arith.constant 0 : index
      %c0_18 = arith.constant 0 : index
      %c0_19 = arith.constant 0 : index
      %27 = vector.load %arg2[%c0_17, %c0_18, %c0_19] : memref<1x16x32xf32, #tpu.memory_space<vmem>>, vector<1x16x32xf32>
      %28 = vector.shape_cast %27 : vector<1x16x32xf32> to vector<16x32xf32>
      %cst_20 = arith.constant dense<0.000000e+00> : vector<16xf32>
      %29 = vector.multi_reduction <add>, %28, %cst_20 [1] : vector<16x32xf32> to vector<16xf32>
      %30 = vector.shape_cast %29 : vector<16xf32> to vector<16x1xf32>
      %cst_21 = arith.constant 3.200000e+01 : f32
      %31 = vector.broadcast %cst_21 : f32 to vector<16x1xf32>
      %32 = arith.divf %30, %31 : vector<16x1xf32>
      %33 = vector.broadcast %32 : vector<16x1xf32> to vector<16x32xf32>
      %34 = arith.subf %28, %33 : vector<16x32xf32>
      %35 = arith.mulf %34, %34 : vector<16x32xf32>
      %cst_22 = arith.constant dense<0.000000e+00> : vector<16xf32>
      %36 = vector.multi_reduction <add>, %35, %cst_22 [1] : vector<16x32xf32> to vector<16xf32>
      %37 = vector.shape_cast %36 : vector<16xf32> to vector<16x1xf32>
      %cst_23 = arith.constant 3.200000e+01 : f32
      %38 = vector.broadcast %cst_23 : f32 to vector<16x1xf32>
      %39 = arith.divf %37, %38 : vector<16x1xf32>
      %40 = vector.broadcast %32 : vector<16x1xf32> to vector<16x32xf32>
      %41 = arith.subf %28, %40 : vector<16x32xf32>
      %cst_24 = arith.constant 9.99999974E-6 : f32
      %42 = vector.broadcast %cst_24 : f32 to vector<16x1xf32>
      %43 = arith.addf %39, %42 : vector<16x1xf32>
      %44 = math.rsqrt %43 : vector<16x1xf32>
      %45 = vector.broadcast %44 : vector<16x1xf32> to vector<16x32xf32>
      %46 = arith.mulf %41, %45 : vector<16x32xf32>
      %c0_25 = arith.constant 0 : index
      %c0_26 = arith.constant 0 : index
      %47 = vector.load %arg3[%c0_25, %c0_26] : memref<1x32xf32, #tpu.memory_space<vmem>>, vector<1x32xf32>
      %48 = vector.broadcast %47 : vector<1x32xf32> to vector<16x32xf32>
      %49 = arith.mulf %46, %48 : vector<16x32xf32>
      %c0_27 = arith.constant 0 : index
      %c0_28 = arith.constant 0 : index
      %50 = vector.load %arg4[%c0_27, %c0_28] : memref<1x32xf32, #tpu.memory_space<vmem>>, vector<1x32xf32>
      %51 = vector.broadcast %50 : vector<1x32xf32> to vector<16x32xf32>
      %52 = arith.addf %49, %51 : vector<16x32xf32>
      %c0_29 = arith.constant 0 : index
      %c0_30 = arith.constant 0 : index
      %53 = vector.load %arg10[%c0_29, %c0_30] : memref<16x32xf32, #tpu.memory_space<vmem>>, vector<16x32xf32>
      tpu.vector_store %arg10[%c0_29, %c0_30], %52 {strides = array<i32>} : memref<16x32xf32, #tpu.memory_space<vmem>>, vector<16x32xf32>,
      %c0_31 = arith.constant 0 : index
      %c0_32 = arith.constant 0 : index
      %54 = vector.load %arg8[%c0_31, %c0_32] : memref<1x32xf32, #tpu.memory_space<vmem>>, vector<1x32xf32>
      %55 = vector.broadcast %54 : vector<1x32xf32> to vector<16x32xf32>
      %56 = arith.addf %28, %55 : vector<16x32xf32>
      %c0_33 = arith.constant 0 : index
      %c0_34 = arith.constant 0 : index
      %c0_35 = arith.constant 0 : index
      %57 = vector.load %arg9[%c0_33, %c0_34, %c0_35] : memref<1x16x32xf32, #tpu.memory_space<vmem>>, vector<1x16x32xf32>
      %58 = vector.shape_cast %57 : vector<1x16x32xf32> to vector<16x32xf32>
      %59 = vector.shape_cast %56 : vector<16x32xf32> to vector<1x16x32xf32>
      tpu.vector_store %arg9[%c0_33, %c0_34, %c0_35], %59 {strides = array<i32>} : memref<1x16x32xf32, #tpu.memory_space<vmem>>, vector<1x16x32xf32>,
    } else {
    }
    %c0 = arith.constant 0 : index
    %c0_1 = arith.constant 0 : index
    %3 = vector.load %arg10[%c0, %c0_1] : memref<16x32xf32, #tpu.memory_space<vmem>>, vector<16x32xf32>
    %4 = arith.truncf %3 : vector<16x32xf32> to vector<16x32xbf16>
    %c0_2 = arith.constant 0 : index
    %c0_3 = arith.constant 0 : index
    %5 = vector.load %arg5[%c0_2, %c0_3] : memref<32x128xbf16, #tpu.memory_space<vmem>>, vector<32x128xbf16>
    %cst = arith.constant dense<0.000000e+00> : vector<16x128xf32>
    %6 = tpu.matmul %4, %5, %cst {dimension_numbers = #tpu.dot_dimension_numbers<[1], [0], [0], [1], [0, 0, 1, 1], [], []>} : vector<16x32xbf16>, vector<32x128xbf16>, vector<16x128xf32> -> vector<16x128xf32>
    %c0_4 = arith.constant 0 : index
    %c0_5 = arith.constant 0 : index
    %7 = vector.load %arg6[%c0_4, %c0_5] : memref<1x128xf32, #tpu.memory_space<vmem>>, vector<1x128xf32>
    %8 = vector.broadcast %7 : vector<1x128xf32> to vector<16x128xf32>
    %9 = arith.addf %6, %8 : vector<16x128xf32>
    %cst_6 = arith.constant 1.702000e+00 : f32
    %10 = vector.broadcast %cst_6 : f32 to vector<16x128xf32>
    %11 = arith.mulf %10, %9 : vector<16x128xf32>
    %12 = arith.negf %11 : vector<16x128xf32>
    %13 = math.exp %12 : vector<16x128xf32>
    %cst_7 = arith.constant 1.000000e+00 : f32
    %14 = vector.broadcast %cst_7 : f32 to vector<16x128xf32>
    %15 = arith.addf %14, %13 : vector<16x128xf32>
    %16 = arith.divf %14, %15 : vector<16x128xf32>
    %17 = arith.mulf %9, %16 : vector<16x128xf32>
    %c0_8 = arith.constant 0 : index
    %c0_9 = arith.constant 0 : index
    %c0_10 = arith.constant 0 : index
    %18 = vector.load %arg9[%c0_8, %c0_9, %c0_10] : memref<1x16x32xf32, #tpu.memory_space<vmem>>, vector<1x16x32xf32>
    %19 = vector.shape_cast %18 : vector<1x16x32xf32> to vector<16x32xf32>
    %20 = arith.truncf %17 : vector<16x128xf32> to vector<16x128xbf16>
    %c0_11 = arith.constant 0 : index
    %c0_12 = arith.constant 0 : index
    %21 = vector.load %arg7[%c0_11, %c0_12] : memref<128x32xbf16, #tpu.memory_space<vmem>>, vector<128x32xbf16>
    %cst_13 = arith.constant dense<0.000000e+00> : vector<16x32xf32>
    %22 = tpu.matmul %20, %21, %cst_13 {dimension_numbers = #tpu.dot_dimension_numbers<[1], [0], [0], [1], [0, 0, 1, 1], [], []>} : vector<16x128xbf16>, vector<128x32xbf16>, vector<16x32xf32> -> vector<16x32xf32>
    %23 = arith.addf %19, %22 : vector<16x32xf32>
    %c0_14 = arith.constant 0 : index
    %c0_15 = arith.constant 0 : index
    %c0_16 = arith.constant 0 : index
    %24 = vector.load %arg9[%c0_14, %c0_15, %c0_16] : memref<1x16x32xf32, #tpu.memory_space<vmem>>, vector<1x16x32xf32>
    %25 = vector.shape_cast %24 : vector<1x16x32xf32> to vector<16x32xf32>
    %26 = vector.shape_cast %23 : vector<16x32xf32> to vector<1x16x32xf32>
    tpu.vector_store %arg9[%c0_14, %c0_15, %c0_16], %26 {strides = array<i32>} : memref<1x16x32xf32, #tpu.memory_space<vmem>>, vector<1x16x32xf32>,
    return
  }
  func.func @transform_0(%arg0: i32, %arg1: i32) -> (i32, i32, i32) {
    %c0_i32 = arith.constant 0 : i32
    %c0_i32_0 = arith.constant 0 : i32
    %c0_i32_1 = arith.constant 0 : i32
    return %arg0, %c0_i32, %c0_i32_0 : i32, i32, i32
  }
  func.func @transform_1(%arg0: i32, %arg1: i32) -> (i32, i32) {
    %c0_i32 = arith.constant 0 : i32
    %c0_i32_0 = arith.constant 0 : i32
    %c0_i32_1 = arith.constant 0 : i32
    return %c0_i32, %c0_i32_0 : i32, i32
  }
  func.func @transform_2(%arg0: i32, %arg1: i32) -> (i32, i32) {
    %c0_i32 = arith.constant 0 : i32
    %c0_i32_0 = arith.constant 0 : i32
    %c0_i32_1 = arith.constant 0 : i32
    return %c0_i32, %c0_i32_0 : i32, i32
  }
  func.func @transform_3(%arg0: i32, %arg1: i32) -> (i32, i32) {
    %c0_i32 = arith.constant 0 : i32
    %c0_i32_0 = arith.constant 0 : i32
    return %c0_i32, %arg1 : i32, i32
  }
  func.func @transform_4(%arg0: i32, %arg1: i32) -> (i32, i32) {
    %c0_i32 = arith.constant 0 : i32
    %c0_i32_0 = arith.constant 0 : i32
    return %c0_i32, %arg1 : i32, i32
  }
  func.func @transform_5(%arg0: i32, %arg1: i32) -> (i32, i32) {
    %c0_i32 = arith.constant 0 : i32
    %c0_i32_0 = arith.constant 0 : i32
    return %arg1, %c0_i32 : i32, i32
  }
  func.func @transform_6(%arg0: i32, %arg1: i32) -> (i32, i32) {
    %c0_i32 = arith.constant 0 : i32
    %c0_i32_0 = arith.constant 0 : i32
    %c0_i32_1 = arith.constant 0 : i32
    return %c0_i32, %c0_i32_0 : i32, i32
  }
  func.func @transform_7(%arg0: i32, %arg1: i32) -> (i32, i32, i32) {
    %c0_i32 = arith.constant 0 : i32
    %c0_i32_0 = arith.constant 0 : i32
    %c0_i32_1 = arith.constant 0 : i32
    return %arg0, %c0_i32, %c0_i32_0 : i32, i32, i32
  }
}

</mosaic_0001>

<bundles_post_ra>
// kernel: block_forward.3
= control target key start
LH: loop header
LB: loop body
LE: loop exit
PB: predicated region body
PF: predicated region fallthrough
CT: control target
= control target key end

     0   :  { %s1018_s24 = smov 0   ;;  %s1145_s0 = inlined_call_operand.vmem [shape: f32[2,16,32], index: 0, kind: input, shape index: {}]   ;;  %s1146_s1 = inlined_call_operand.vmem [shape: f32[2,1,32], index: 1, kind: input, shape index: {}]   ;;  %s1147_s2 = inlined_call_operand.vmem [shape: f32[2,1,32], index: 2, kind: input, shape index: {}]   ;;  %s1148_s3 = inlined_call_operand.vmem [shape: bf16[32,96], index: 3, kind: input, shape index: {}]   ;;  %s1149_s4 = inlined_call_operand.vmem [shape: f32[1,96], index: 4, kind: input, shape index: {}]   ;;  %s1150_s5 = inlined_call_operand.vmem [shape: bf16[32,32], index: 5, kind: input, shape index: {}]   ;;  %s1151_s6 = inlined_call_operand.vmem [shape: f32[1,32], index: 6, kind: input, shape index: {}]   ;;  %s1152_s7 = inlined_call_operand.vmem [shape: f32[2,16,32], index: 7, kind: output, shape index: {}]  }
   0x1 LB: > { %s833_s25 = sadd.s32 4294967295, %s961_s24   ;;  %p837_p0 = scmp.ge.s32.totalorder %s961_s24, 1  ;;  %s961_s24 = sphi %s1018_s24, %s17_s24  }
   0x2   : > { %p253_p1 = scmp.lt.s32.totalorder %s961_s24, 3 }
   0x4   : > { %p254_p2 = pnand %p837_p0, %p253_p1 }
   0x5   : > { %p291_p3 = scmp.lt.s32.totalorder (!%p254_p2), %s833_s25, 1  ;;  %s964_s21 = smov (!%p254_p2), 72  }
   0x6   : > { %257 = sbr.rel (%p254_p2) target bundleno = 1375 (0x55f), region = 48  ;;  %s965_s22 = smov (!%p254_p2), 96  }
   0x7   : > { %s966_s23 = smov (!%p254_p2), 120   ;;  %s967_s27 = smov (!%p254_p2), 88  }
   0x8   : > { %s968_s28 = smov (!%p254_p2), 104   ;;  %s970_s30 = smov (!%p254_p2), 112  }
   0x9   : > { %s971_s8 = smov (!%p254_p2), 64   ;;  %s973_s10 = smov (!%p254_p2), 40  }
   0xa   : > { %s974_s11 = smov (!%p254_p2), 48   ;;  %s975_s12 = smov (!%p254_p2), 8  }
   0xb   : > { %s1154_s25 = smov (!%p291_p3, %s833_s25), 1  ;;  %vm310_vm0 = vcmask 261120   ;;  %v963_v4 = vmov 32.0   ;;  %v873_v21 = vld [vmem:[%s1148_s3 + $0x8] sm:$0xff]  ;;  %v872_v23 = vld [vmem:[%s1148_s3] sm:$0xff]  ;;  %vm425_vm8 = vcmask 64512  }
   0xc   : > { %s870_s26 = sshll.u32 %s1154_s25, 4  ;;  %917 = vrcp.f32 %v963_v4  ;;  %s301_s9 = scalar_lea.vmem %s1147_s2, %s1154_s25  ;;  %405 = vmatpush.bf16.msra.mxu0 %v873_v21  ;;  %v915_v55 = vld [vmem:[%s1149_s4] ss:$0 sm:$0xff]  ;;  %vm446_vm9 = vcmask 130048   ;;  %vm720_vm10 = vcmask 195584  }
   0xd   : > { %s295_s29 = scalar_lea.vmem %s1145_s0, %s870_s26  ;;  %s298_s16 = scalar_lea.vmem %s1146_s1, %s1154_s25  ;;  %v914_v49 = vld [vmem:[%s301_s9] ss:$0 sm:$0xff] }
   0xe   : > { %v1034_v0 = vld [vmem:[%s295_s29] sm:$0xff]  ;;  %v1038_v2 = vld [vmem:[%s295_s29 + $0x8] sm:$0xff]  ;;  %s969_s29 = smov 80   ;;  %s972_s9 = smov 56  }
   0xf   : > { %v311_v1 = vsel %vm310_vm0, %v1034_v0, 0.0  ;;  %v314_v3 = vsel %vm310_vm0, %v1038_v2, 0.0  ;;  %v362_v37 = vld [vmem:[%s298_s16] sm:$0x1]  ;;  %s976_s13 = smov 24   ;;  %s977_s14 = smov 16  }
  0x10   : > { %312 = vadd.xlane.f32.xlu0 %v311_v1  ;;  %406 = vmatpush.bf16.msra.mxu0 %v872_v23  ;;  %v363_v39 = vadd.f32 1.0, %v362_v37 }
  0x12   : > { %v918_v5 = vpop.eup %917  ;;  %v365_v44 = vperm.slane %v363_v39, 0 }
  0x13   : > { %v318_v6 = vmul.f32 32.0, %v918_v5  ;;  %vm322_vm1 = vweird.f32 %v918_v5 }
  0x15   : > { %v319_v7 = vsub.f32 1.0, %v318_v6 }
  0x17   : > { %v320_v8 = vmul.f32 %v918_v5, %v319_v7 }
  0x18   : > { %315 = vadd.xlane.f32.xlu0 %v314_v3 }
  0x19   : > { %v321_v9 = vadd.f32 %v918_v5, %v320_v8 }
  0x1b   : > { %v323_v10 = vsel %vm322_vm1, %v918_v5, %v321_v9 }
  0x83   : > { %v313_v11 = vpop.xlane.xlu0 %312 }
  0x84   : > { %v324_v12 = vmul.f32 %v323_v10, %v313_v11 }
  0x86   : > { %v326_v13 = vsub.f32 %v1034_v0, %v324_v12 }
  0x88   : > { %v328_v14 = vmul.f32 %v326_v13, %v326_v13 }
  0x8a   : > { %v330_v15 = vsel %vm310_vm0, %v328_v14, 0.0 }
  0x8b   : > { %331 = vadd.xlane.f32.xlu1 %v330_v15  ;;  %v316_v16 = vpop.xlane.xlu0 %315 }
  0x8c   : > { %v325_v17 = vmul.f32 %v323_v10, %v316_v16 }
  0x8e   : > { %v327_v18 = vsub.f32 %v1038_v2, %v325_v17 }
  0x90   : > { %v329_v19 = vmul.f32 %v327_v18, %v327_v18 }
  0x92   : > { %v333_v20 = vsel %vm310_vm0, %v329_v19, 0.0 }
  0x93   : > { %334 = vadd.xlane.f32.xlu1 %v333_v20 }
  0xfe   : > { %v332_v22 = vpop.xlane.xlu1 %331 }
  0xff   : > { %v336_v24 = vmul.f32 %v332_v22, %v323_v10 }
 0x101   : > { %v338_v25 = vadd.f32 1e-05, %v336_v24 }
 0x103   : > { %919 = vrsqrt.f32 %v338_v25  ;;  %vm346_vm3 = vweird.f32 %v338_v25 }
 0x106   : > { %v335_v26 = vpop.xlane.xlu1 %334 }
 0x107   : > { %v337_v27 = vmul.f32 %v335_v26, %v323_v10 }
 0x109   : > { %v920_v28 = vpop.eup %919  ;;  %v339_v29 = vadd.f32 1e-05, %v337_v27 }
 0x10a   : > { %v341_v30 = vmul.f32 %v920_v28, %v338_v25  ;;  %vm347_vm2 = vweird.f32 %v920_v28 }
 0x10b   : > { %921 = vrsqrt.f32 %v339_v29  ;;  %vm348_vm4 = vmor %vm346_vm3, %vm347_vm2  ;;  %vm356_vm6 = vweird.f32 %v339_v29 }
 0x10c   : > { %v342_v31 = vmul.f32 %v920_v28, %v341_v30 }
 0x10e   : > { %v343_v32 = vmul.f32 0.5, %v342_v31 }
 0x110   : > { %v344_v33 = vsub.f32 1.5, %v343_v32 }
 0x111   : > { %v922_v34 = vpop.eup %921 }
 0x112   : > { %v345_v35 = vmul.f32 %v920_v28, %v344_v33  ;;  %v351_v36 = vmul.f32 %v922_v34, %v339_v29  ;;  %vm357_vm5 = vweird.f32 %v922_v34 }
 0x113   : > { %vm358_vm7 = vmor %vm356_vm6, %vm357_vm5 }
 0x114   : > { %v352_v38 = vmul.f32 %v922_v34, %v351_v36  ;;  %v349_v40 = vsel %vm348_vm4, %v920_v28, %v345_v35 }
 0x115   : > { %v360_v43 = vmul.f32 %v349_v40, %v326_v13 }
 0x116   : > { %v353_v41 = vmul.f32 0.5, %v352_v38 }
 0x117   : > { %v367_v48 = vmul.f32 %v365_v44, %v360_v43 }
 0x118   : > { %v354_v42 = vsub.f32 1.5, %v353_v41 }
 0x119   : > { %v373_v51 = vadd.f32 %v914_v49, %v367_v48 }
 0x11a   : > { %v355_v45 = vmul.f32 %v922_v34, %v354_v42 }
 0x11c   : > { %v359_v46 = vsel %vm358_vm7, %v922_v34, %v355_v45 }
 0x11d   : > { %v361_v47 = vmul.f32 %v359_v46, %v327_v18 }
 0x11f   : > { %v368_v50 = vmul.f32 %v365_v44, %v361_v47 }
 0x121   : > { %v374_v52 = vadd.f32 %v914_v49, %v368_v50 }
 0x123   : > { %v375_v53 = vpack.c.bf16 %v374_v52, %v373_v51 }
 0x125   : > { %850 = vmatmul.msk.bf16.vlgmr.msra.gmra.mxu0 %vm310_vm0, %v375_v53 }
 0x1a2   : > { %v408_v54 = vpop.f32.mrf.mxu0 }
 0x1a3   : > { %v409_v56 = vadd.f32 %v915_v55, %v408_v54 }
 0x1a5   : > { %v418_v59 = vmul.f32 0.35355338, %v409_v56 }
 0x1aa   : > { %v410_v57 = vpop.f32.mrf.mxu0 }
 0x1ab   : > { %v411_v58 = vadd.f32 %v915_v55, %v410_v57 }
 0x1ad   : > { %v419_v60 = vmul.f32 0.35355338, %v411_v58  ;;  %v1069_v61 = vpack.c.bf16 %v411_v58, %v409_v56 }
 0x1af   : > { %v420_v62 = vpack.c.bf16 %v419_v60, %v418_v59  ;;  %627 = vrot.lane.b32.xlu1 %v1069_v61, %s964_s21  ;;  %423 = vrot.lane.b32.xlu2 %v1069_v61, %s965_s22 }
 0x1b1   : > { %491 = vrot.lane.b32.xlu0 %v420_v62, %s966_s23  ;;  %s306_s23 = scalar_lea.vmem %s1152_s7, %s870_s26 }
 0x1b7   : > { %493 = vrot.lane.b32.xlu2 %v1069_v61, %s967_s27 }
 0x1bf   : > { %625 = vrot.lane.b32.xlu2 %v420_v62, %s968_s28 }
 0x1c7   : > { %560 = vrot.lane.b32.xlu2 %v1069_v61, %s969_s29 }
 0x1cf   : > { %558 = vrot.lane.b32.xlu2 %v420_v62, %s970_s30 }
 0x209   : > { %v424_v63 = vpop.permute.xlu2 %423 }
 0x20a   : > { %v430_v1 = vsel %vm425_vm8, %v424_v63, 0 }
 0x20b   : > { %439 = vmatpush.bf16.xpose.msra.mxu1 %v430_v1 }
 0x211   : > { %v494_v3 = vpop.permute.xlu2 %493 }
 0x212   : > { %851 = vmatmul.msk.bf16.vlgmr.msra.gmra.mxu1 %vm425_vm8, %v420_v62  ;;  %v499_v4 = vsel %vm425_vm8, %v494_v3, 0 }
 0x213   : > { %508 = vmatpush.bf16.xpose.msra.mxu3 %v499_v4 }
 0x219   : > { %v626_v5 = vpop.permute.xlu2 %625 }
 0x221   : > { %v628_v6 = vpop.permute.xlu1 %627  ;;  %v561_v7 = vpop.permute.xlu2 %560 }
 0x222   : > { %v566_v8 = vsel %vm425_vm8, %v561_v7, 0  ;;  %v633_v9 = vsel %vm425_vm8, %v628_v6, 0 }
 0x223   : > { %575 = vmatpush.bf16.xpose.msrb.mxu0 %v566_v8  ;;  %642 = vmatpush.bf16.xpose.msrb.mxu3 %v633_v9  ;;  %v492_v10 = vpop.permute.xlu0 %491 }
 0x224   : > { %853 = vmatmul.msk.bf16.vlgmr.msra.gmra.mxu3 %vm425_vm8, %v492_v10 }
 0x229   : > { %v559_v11 = vpop.permute.xlu2 %558 }
 0x22a   : > { %855 = vmatmul.msk.bf16.vlgmr.msrb.gmra.mxu0 %vm425_vm8, %v559_v11 }
 0x234   : > { %857 = vmatmul.msk.bf16.vlgmr.msrb.gmra.mxu3 %vm425_vm8, %v626_v5 }
 0x28f   : > { %v441_v12 = vpop.f32.mrf.mxu1 }
 0x290   : > { %v447_v13 = vsel %vm446_vm9, %v441_v12, -inf }
 0x291   : > { %448 = vmax.xlane.f32.xlu0 %v447_v13 }
 0x297   : > { %v443_v14 = vpop.f32.mrf.mxu1 }
 0x298   : > { %v450_v15 = vsel %vm446_vm9, %v443_v14, -inf }
 0x299   : > { %451 = vmax.xlane.f32.xlu2 %v450_v15 }
 0x2a7   : > { %v510_v16 = vpop.f32.mrf.mxu3  ;;  %v577_v17 = vpop.f32.mrf.mxu0 }
 0x2a8   : > { %v515_v18 = vsel %vm446_vm9, %v510_v16, -inf  ;;  %v582_v19 = vsel %vm446_vm9, %v577_v17, -inf }
 0x2a9   : > { %516 = vmax.xlane.f32.xlu1 %v515_v18  ;;  %583 = vmax.xlane.f32.xlu0 %v582_v19 }
 0x2af   : > { %v512_v20 = vpop.f32.mrf.mxu3  ;;  %v579_v21 = vpop.f32.mrf.mxu0 }
 0x2b0   : > { %v518_v22 = vsel %vm446_vm9, %v512_v20, -inf  ;;  %v585_v23 = vsel %vm446_vm9, %v579_v21, -inf }
 0x2b1   : > { %519 = vmax.xlane.f32.xlu0 %v518_v22  ;;  %586 = vmax.xlane.f32.xlu2 %v585_v23 }
 0x2b7   : > { %v644_v24 = vpop.f32.mrf.mxu3 }
 0x2b8   : > { %v649_v25 = vsel %vm446_vm9, %v644_v24, -inf }
 0x2b9   : > { %650 = vmax.xlane.f32.xlu2 %v649_v25 }
 0x2bf   : > { %v646_v26 = vpop.f32.mrf.mxu3 }
 0x2c0   : > { %v652_v27 = vsel %vm446_vm9, %v646_v26, -inf }
 0x2c1   : > { %653 = vmax.xlane.f32.xlu1 %v652_v27 }
 0x2d1   : > { %470 = vrot.lane.b32.xlu2 %v1069_v61, %s971_s8 }
 0x2da   : > { %538 = vrot.lane.b32.xlu1 %v1069_v61, %s972_s9 }
 0x304   : > { %v449_v28 = vpop.xlane.xlu0 %448 }
 0x305   : > { %v453_v29 = vsub.f32 %v441_v12, %v449_v28 }
 0x307   : > { %v455_v30 = vmul.f32 1.442695, %v453_v29 }
 0x309   : > { %923 = vpow2.f32 %v455_v30 }
 0x30c   : > { %v452_v31 = vpop.xlane.xlu2 %451 }
 0x30d   : > { %v454_v32 = vsub.f32 %v443_v14, %v452_v31 }
 0x30f   : > { %v1093_v33 = vpop.eup %923  ;;  %v457_v34 = vmul.f32 1.442695, %v454_v32 }
 0x310   : > { %v459_v35 = vsel %vm446_vm9, %v1093_v33, 0.0 }
 0x311   : > { %925 = vpow2.f32 %v457_v34  ;;  %460 = vadd.xlane.f32.xlu1 %v459_v35 }
 0x317   : > { %v926_v36 = vpop.eup %925 }
 0x318   : > { %v462_v37 = vsel %vm446_vm9, %v926_v36, 0.0 }
 0x319   : > { %463 = vadd.xlane.f32.xlu0 %v462_v37 }
 0x31c   : > { %v517_v38 = vpop.xlane.xlu1 %516  ;;  %v584_v39 = vpop.xlane.xlu0 %583 }
 0x31d   : > { %v521_v40 = vsub.f32 %v510_v16, %v517_v38  ;;  %v588_v41 = vsub.f32 %v577_v17, %v584_v39 }
 0x31f   : > { %v523_v42 = vmul.f32 1.442695, %v521_v40  ;;  %v590_v43 = vmul.f32 1.442695, %v588_v41 }
 0x321   : > { %927 = vpow2.f32 %v523_v42 }
 0x322   : > { %929 = vpow2.f32 %v590_v43 }
 0x324   : > { %v587_v44 = vpop.xlane.xlu2 %586  ;;  %v520_v45 = vpop.xlane.xlu0 %519 }
 0x325   : > { %v589_v46 = vsub.f32 %v579_v21, %v587_v44  ;;  %v522_v50 = vsub.f32 %v512_v20, %v520_v45 }
 0x327   : > { %v928_v47 = vpop.eup %927  ;;  %v592_v48 = vmul.f32 1.442695, %v589_v46  ;;  %v525_v53 = vmul.f32 1.442695, %v522_v50  ;;  %v874_v50 = vld [vmem:[%s1150_s5] sm:$0xff] }
 0x328   : > { %v1098_v49 = vpop.eup %929  ;;  %v527_v51 = vsel %vm446_vm9, %v928_v47, 0.0 }
 0x329   : > { %528 = vadd.xlane.f32.xlu1 %v527_v51  ;;  %v594_v52 = vsel %vm446_vm9, %v1098_v49, 0.0  ;;  %931 = vpow2.f32 %v592_v48 }
 0x32a   : > { %595 = vadd.xlane.f32.xlu2 %v594_v52  ;;  %933 = vpow2.f32 %v525_v53 }
 0x32c   : > { %v651_v54 = vpop.xlane.xlu2 %650 }
 0x32d   : > { %v655_v56 = vsub.f32 %v644_v24, %v651_v54 }
 0x32f   : > { %v1103_v55 = vpop.eup %931  ;;  %v657_v58 = vmul.f32 1.442695, %v655_v56 }
 0x330   : > { %v597_v57 = vsel %vm446_vm9, %v1103_v55, 0.0  ;;  %v934_v62 = vpop.eup %933 }
 0x331   : > { %598 = vadd.xlane.f32.xlu0 %v597_v57  ;;  %935 = vpow2.f32 %v657_v58  ;;  %v530_v1 = vsel %vm446_vm9, %v934_v62, 0.0 }
 0x334   : > { %v471_v59 = vpop.permute.xlu2 %470  ;;  %v654_v60 = vpop.xlane.xlu1 %653 }
 0x335   : > { %483 = vmatpush.bf16.msra.mxu2 %v471_v59  ;;  %v656_v63 = vsub.f32 %v646_v26, %v654_v60 }
 0x337   : > { %v659_v3 = vmul.f32 1.442695, %v656_v63  ;;  %v936_v4 = vpop.eup %935 }
 0x338   : > { %v661_v5 = vsel %vm446_vm9, %v936_v4, 0.0 }
 0x339   : > { %531 = vadd.xlane.f32.xlu0 %v530_v1  ;;  %937 = vpow2.f32 %v659_v3 }
 0x33f   : > { %v938_v6 = vpop.eup %937 }
 0x340   : > { %v664_v7 = vsel %vm446_vm9, %v938_v6, 0.0 }
 0x341   : > { %662 = vadd.xlane.f32.xlu0 %v661_v5 }
 0x342   : > { %672 = vrot.lane.b32.xlu1 %v1069_v61, %s973_s10 }
 0x349   : > { %665 = vadd.xlane.f32.xlu0 %v664_v7 }
 0x34c   : > { %v539_v8 = vpop.permute.xlu1 %538 }
 0x34d   : > { %551 = vmatpush.bf16.msrb.mxu2 %v539_v8 }
 0x35d   : > { %605 = vrot.lane.b32.xlu0 %v1069_v61, %s974_s11 }
 0x384   : > { %v461_v9 = vpop.xlane.xlu1 %460 }
 0x385   : > { %939 = vrcp.f32 %v461_v9 }
 0x38b   : > { %v940_v11 = vpop.eup %939 }
 0x38c   : > { %v464_v10 = vpop.xlane.xlu0 %463  ;;  %v467_v13 = vmul.f32 %v940_v11, %v1093_v33 }
 0x38d   : > { %941 = vrcp.f32 %v464_v10 }
 0x393   : > { %v942_v12 = vpop.eup %941 }
 0x394   : > { %v468_v14 = vmul.f32 %v942_v12, %v926_v36 }
 0x396   : > { %v469_v15 = vpack.c.bf16 %v468_v14, %v467_v13 }
 0x398   : > { %852 = vmatmul.msk.bf16.vlgmr.msra.gmra.mxu2 %vm446_vm9, %v469_v15 }
 0x39c   : > { %v529_v17 = vpop.xlane.xlu1 %528 }
 0x39d   : > { %943 = vrcp.f32 %v529_v17  ;;  %v596_v28 = vpop.xlane.xlu2 %595 }
 0x3a3   : > { %v944_v19 = vpop.eup %943 }
 0x3a4   : > { %v599_v16 = vpop.xlane.xlu0 %598  ;;  %v535_v21 = vmul.f32 %v944_v19, %v928_v47 }
 0x3ac   : > { %v532_v18 = vpop.xlane.xlu0 %531 }
 0x3ad   : > { %945 = vrcp.f32 %v532_v18 }
 0x3b3   : > { %v946_v20 = vpop.eup %945 }
 0x3b4   : > { %v673_v61 = vpop.permute.xlu1 %672  ;;  %v536_v22 = vmul.f32 %v946_v20, %v934_v62  ;;  %v663_v23 = vpop.xlane.xlu0 %662 }
 0x3b5   : > { %685 = vmatpush.bf16.msra.mxu2 %v673_v61  ;;  %947 = vrcp.f32 %v663_v23 }
 0x3b6   : > { %v537_v24 = vpack.c.bf16 %v536_v22, %v535_v21 }
 0x3b8   : > { %854 = vmatmul.msk.bf16.vlgmr.msrb.gmra.mxu2 %vm446_vm9, %v537_v24 }
 0x3bb   : > { %v948_v26 = vpop.eup %947 }
 0x3bc   : > { %v666_v25 = vpop.xlane.xlu0 %665  ;;  %v669_v29 = vmul.f32 %v948_v26, %v936_v4 }
 0x3bd   : > { %949 = vrcp.f32 %v666_v25 }
 0x3be   : > { %951 = vrcp.f32 %v599_v16 }
 0x3bf   : > { %953 = vrcp.f32 %v596_v28 }
 0x3c3   : > { %v950_v27 = vpop.eup %949 }
 0x3c4   : > { %v670_v30 = vmul.f32 %v950_v27, %v938_v6  ;;  %v952_v32 = vpop.eup %951  ;;  %v916_v6 = vld [vmem:[%s1151_s6] ss:$0 sm:$0xff] }
 0x3c5   : > { %v954_v33 = vpop.eup %953  ;;  %v603_v34 = vmul.f32 %v952_v32, %v1103_v55 }
 0x3c6   : > { %v671_v31 = vpack.c.bf16 %v670_v30, %v669_v29  ;;  %v602_v35 = vmul.f32 %v954_v33, %v1098_v49  ;;  %v875_v49 = vld [vmem:[%s1150_s5 + $0x8] sm:$0xff] }
 0x3c7   : > { %748 = vmatpush.bf16.msra.mxu0 %v875_v49 }
 0x3c8   : > { %858 = vmatmul.msk.bf16.vlgmr.msra.gmra.mxu2 %vm446_vm9, %v671_v31  ;;  %v604_v37 = vpack.c.bf16 %v603_v34, %v602_v35 }
 0x3cb   : > { %749 = vmatpush.bf16.msra.mxu0 %v874_v50 }
 0x3cf   : > { %v606_v36 = vpop.permute.xlu0 %605 }
 0x3d0   : > { %618 = vmatpush.bf16.msrb.mxu1 %v606_v36 }
 0x3d3   : > { %856 = vmatmul.msk.bf16.vlgmr.msrb.gmra.mxu1 %vm446_vm9, %v604_v37 }
 0x41b   : > { %v485_v38 = vpop.f32.mrf.mxu2 }
 0x423   : > { %v487_v39 = vpop.f32.mrf.mxu2 }
 0x43b   : > { %v553_v40 = vpop.f32.mrf.mxu2 }
 0x443   : > { %v555_v41 = vpop.f32.mrf.mxu2 }
 0x444   : > { %v899_v42 = vpack.i.bf16 %v555_v41, %v553_v40 }
 0x446   : > { %900 = vrot.lane.b32.xlu1 %v899_v42, %s975_s12 }
 0x44b   : > { %v687_v43 = vpop.f32.mrf.mxu2 }
 0x450   : > { %v620_v44 = vpop.f32.mrf.mxu1 }
 0x453   : > { %v689_v45 = vpop.f32.mrf.mxu2 }
 0x454   : > { %v909_v46 = vpack.i.bf16 %v689_v45, %v687_v43 }
 0x456   : > { %910 = vrot.lane.b32.xlu0 %v909_v46, %s976_s13 }
 0x458   : > { %v622_v47 = vpop.f32.mrf.mxu1 }
 0x459   : > { %v904_v48 = vpack.i.bf16 %v622_v47, %v620_v44 }
 0x45b   : > { %905 = vrot.lane.b32.xlu1 %v904_v48, %s977_s14 }
 0x4b8   : > { %v901_v51 = vpop.permute.xlu1 %900 }
 0x4b9   : > { %v903_v52 = vunpack.i.h.bf16 %v901_v51  ;;  %v902_v53 = vunpack.i.l.bf16 %v901_v51 }
 0x4bb   : > { %v717_v58 = vsel %vm425_vm8, %v487_v39, %v903_v52  ;;  %v716_v59 = vsel %vm425_vm8, %v485_v38, %v902_v53 }
 0x4c8   : > { %v911_v54 = vpop.permute.xlu0 %910 }
 0x4c9   : > { %v913_v60 = vunpack.i.h.bf16 %v911_v54  ;;  %v912_v62 = vunpack.i.l.bf16 %v911_v54 }
 0x4cd   : > { %v906_v55 = vpop.permute.xlu1 %905 }
 0x4ce   : > { %v908_v56 = vunpack.i.h.bf16 %v906_v55  ;;  %v907_v57 = vunpack.i.l.bf16 %v906_v55 }
 0x4d0   : > { %v719_v63 = vsel %vm446_vm9, %v717_v58, %v908_v56  ;;  %v718_v1 = vsel %vm446_vm9, %v716_v59, %v907_v57 }
 0x4d1   : > { %v722_v3 = vsel %vm720_vm10, %v719_v63, %v913_v60  ;;  %v721_v4 = vsel %vm720_vm10, %v718_v1, %v912_v62 }
 0x4d2   : > { %v723_v5 = vpack.c.bf16 %v722_v3, %v721_v4 }
 0x4d4   : > { %867 = vmatmul.msk.bf16.vlgmr.msra.gmra.mxu0 %vm310_vm0, %v723_v5 }
 0x551   : > { %v751_v7 = vpop.f32.mrf.mxu0 }
 0x552   : > { %v752_v8 = vadd.f32 %v916_v6, %v751_v7 }
 0x554   : > { %v756_v9 = vadd.f32 %v752_v8, %v1034_v0 }
 0x556   : > { %758 = vst.msk [vmem:[%s306_s23] sm:$0xff] %vm310_vm0, %v756_v9 }
 0x559   : > { %v753_v10 = vpop.f32.mrf.mxu0 }
 0x55a   : > { %v754_v11 = vadd.f32 %v916_v6, %v753_v10 }
 0x55c   : > { %v757_v12 = vadd.f32 %v754_v11, %v1038_v2 }
 0x55e   : > { %759 = vst.msk [vmem:[%s306_s23 + $0x8] sm:$0xff] %vm310_vm0, %v757_v12 }
 0x55f PF: > { %s17_s24 = sadd.s32 1, %s961_s24  }
 0x560   : > { %p14_p4 = scmp.ge.s32.totalorder %s17_s24, 4  }
 0x562   :  { %16 = sbr.rel (!%p14_p4) target bundleno = 1 (0x1), region = 84 }

// kernel: block_forward.5
= control target key start
LH: loop header
LB: loop body
LE: loop exit
PB: predicated region body
PF: predicated region fallthrough
CT: control target
= control target key end

     0   :  { %12 = vsyncpa [#allocation4], 0  ;;  %s1152_s0 = inlined_call_operand.vmem [shape: f32[2,16,32], index: 0, kind: input, shape index: {}]   ;;  %s1153_s1 = inlined_call_operand.vmem [shape: f32[1,32], index: 1, kind: input, shape index: {}]   ;;  %s1154_s2 = inlined_call_operand.vmem [shape: f32[1,32], index: 2, kind: input, shape index: {}]   ;;  %s1155_s3 = inlined_call_operand.vmem [shape: bf16[32,128], index: 3, kind: input, shape index: {}]   ;;  %s1156_s4 = inlined_call_operand.vmem [shape: f32[1,128], index: 4, kind: input, shape index: {}]   ;;  %s1157_s5 = inlined_call_operand.vmem [shape: bf16[128,32], index: 5, kind: input, shape index: {}]   ;;  %s1158_s6 = inlined_call_operand.vmem [shape: f32[1,32], index: 6, kind: input, shape index: {}]   ;;  %s1159_s7 = inlined_call_operand.hbm [shape: f32[2,16,32], index: 7, kind: output, shape index: {}]  }
   0x1   :  { %14 = vsyncpa [#allocation4 + $0x1], 0  ;;  %s989_s24 = smov 0   ;;  %s991_s25 = smov 0  }
   0x2   :  { %s993_s26 = smov 0   ;;  %s995_s27 = smov 0  }
   0x3   :  { %s997_s28 = smov 0   ;;  %s999_s29 = smov 0  }
   0x4 LB: > { %s719_s30 = sadd.s32 4294967295, %s944_s29   ;;  %s720_s8 = sadd.s32 4294967294, %s944_s29   ;;  %s944_s29 = sphi %s999_s29, %s20_s29   ;;  %s940_s28 = sphi %s997_s28, %s1166_s28   ;;  %s936_s27 = sphi %s995_s27, %s1165_s27   ;;  %s932_s26 = sphi %s993_s26, %s1164_s26   ;;  %s928_s25 = sphi %s991_s25, %s1163_s25   ;;  %s924_s24 = sphi %s989_s24, %s1162_s24  }
   0x5   : > { %s32_s9 = sadd.s32 1, %s940_s28  ;;  %s206_s10 = sadd.s32 1, %s932_s26 }
   0x6   : > { %p34_p0 = scmp.ge.s32.totalorder %s32_s9, 2  ;;  %p216_p1 = scmp.ne.s32.totalorder %s932_s26, %s928_s25 }
   0x7   : > { %p217_p2 = scmp.eq.s32.totalorder %s719_s30, 1  ;;  %p222_p3 = scmp.ne.s32.totalorder %s928_s25, %s924_s24 }
   0x8   : > { %s1168_s9 = smov (%p34_p0, %s32_s9), 0  ;;  %p223_p5 = scmp.eq.s32.totalorder %s720_s8, 1 }
   0x9   : > { %p1029_p4 = por %p217_p2, %p216_p1  ;;  %s203_s12 = ssub.s32 %s940_s28, %s1168_s9 }
   0xa   : > { %p726_p6 = scmp.ge.s32.totalorder %s944_s29, 1  ;;  %p204_p7 = scmp.eq.s32.totalorder %s203_s12, 0 }
   0xb   : > { %p1036_p8 = por %p223_p5, %p222_p3  ;;  %p280_p9 = scmp.lt.s32.totalorder %s944_s29, 3 }
   0xc   : > { %s1042_s14 = scalar_select %p204_p7, %s932_s26, %s206_s10  }
   0xd   : > { %p281_p10 = pnand %p726_p6, %p280_p9 }
   0xe   : > { %p324_p11 = scmp.lt.s32.totalorder (!%p281_p10), %s936_s27, 1  ;;  %s321_s15 = sand.u32 (!%p281_p10), 1, %s928_s25  }
   0xf   : > { %284 = sbr.rel (%p281_p10) target bundleno = 621 (0x26d), region = 48  ;;  %s727_s19 = sshll.u32 (!%p281_p10), %s321_s15, 4 }
  0x10   : > { %s1056_s30 = scalar_lea.vmem (!%p281_p10), [#allocation3], %s727_s19  ;;  %s789_s17 = sshll.u32 (!%p281_p10), %s936_s27, 4 }
  0x11   : > { %s604_s21 = sshll.u32 (!%p281_p10), %s1056_s30, 4  ;;  %s605_s21 = int_to_ptr.vmem [resolvable:$true] %s604_s21 }
  0x14   : > { %s325_s16 = scalar_select %p324_p11, %s936_s27, 1  ;;  %v848_v0 = vld [vmem:[%s1158_s6] ss:$0 sm:$0xff]  ;;  %vm349_vm0 = vcmask 261120   ;;  %v946_v7 = vmov 32.0   ;;  %v780_v27 = vld [vmem:[%s1155_s3 + $0x8] sm:$0xff] }
  0x15   : > { %852 = vrcp.f32 %v946_v7  ;;  %456 = vmatpush.bf16.msra.mxu0 %v780_v27  ;;  %v779_v28 = vld [vmem:[%s1155_s3] sm:$0xff]  ;;  %v788_v57 = vld [vmem:[%s1157_s5 + $0x38] sm:$0xff]  ;;  %v787_v58 = vld [vmem:[%s1157_s5 + $0x30] sm:$0xff]  ;;  %s592_s27 = scalar_lea.sflag [#allocation4], %s321_s15 }
  0x16   : > { %s778_s20 = sshll.u32 %s325_s16, 4  ;;  %v849_v40 = vld [vmem:[%s1153_s1] ss:$0 sm:$0xff]  ;;  %573 = vmatpush.bf16.msra.mxu1 %v788_v57  ;;  %v786_v59 = vld [vmem:[%s1157_s5 + $0x28] sm:$0xff]  ;;  %v784_v61 = vld [vmem:[%s1157_s5 + $0x18] sm:$0xff]  ;;  %s886_s16 = scalar_lea.hbm %s1159_s7, 32 }
  0x17   : > { %s328_s23 = scalar_lea.vmem %s1152_s0, %s778_s20  ;;  %v850_v43 = vld [vmem:[%s1154_s2] ss:$0 sm:$0xff]  ;;  %s603_s20 = scalar_lea.hbm %s1159_s7, %s789_s17 }
  0x18   : > { %v347_v1 = vld [vmem:[%s328_s23] sm:$0xff]  ;;  %v348_v2 = vld [vmem:[%s328_s23 + $0x8] sm:$0xff]  ;;  %s606_s22 = sshll.u32 %s603_s20, 4  ;;  %s607_s22 = int_to_ptr.hbm [resolvable:$true] %s606_s22 }
  0x19   : > { %v350_v3 = vsel %vm349_vm0, %v347_v1, 0.0  ;;  %v419_v4 = vadd.f32 %v848_v0, %v347_v1  ;;  %v420_v5 = vadd.f32 %v848_v0, %v348_v2  ;;  %v353_v6 = vsel %vm349_vm0, %v348_v2, 0.0  ;;  %457 = vmatpush.bf16.msra.mxu0 %v779_v28  ;;  %v785_v60 = vld [vmem:[%s1157_s5 + $0x20] sm:$0xff]  ;;  %v783_v0 = vld [vmem:[%s1157_s5 + $0x10] sm:$0xff]  ;;  %s880_s23 = sshra.s32 %s607_s22, 4  ;;  %s881_s23 = int_to_ptr.hbm [resolvable:$true] %s880_s23 }
  0x1a   : > { %351 = vadd.xlane.f32.xlu0 %v350_v3  ;;  %574 = vmatpush.bf16.msra.mxu1 %v787_v58  ;;  %v851_v62 = vld [vmem:[%s1156_s4] ss:$0 sm:$0xff]  ;;  %v782_v3 = vld [vmem:[%s1157_s5 + $0x8] sm:$0xff]  ;;  %s882_s8 = scalar_lea.hbm %s881_s23, 16  ;;  %p887_p1 = scmp.lt.s32.totalorder %s881_s23, %s1159_s7 }
  0x1b   : > { %421 = vst.msk [vmem:[%s1056_s30] sm:$0xff] %vm349_vm0, %v419_v4  ;;  %v853_v8 = vpop.eup %852  ;;  %p883_p12 = scmp.ne.s32.totalorder %s881_s23, %s882_s8  ;;  %p888_p2 = scmp.lt.s32.totalorder %s886_s16, %s882_s8 }
  0x1c   : > { %422 = vst.msk [vmem:[%s1056_s30 + $0x8] sm:$0xff] %vm349_vm0, %v420_v5  ;;  %v357_v9 = vmul.f32 32.0, %v853_v8  ;;  %vm361_vm1 = vweird.f32 %v853_v8 }
  0x1d   : > { %p884_p13 = pnand %p883_p12, %p1029_p4  ;;  %p889_p3 = por %p888_p2, %p887_p1 }
  0x1e   : > { %v358_v10 = vsub.f32 1.0, %v357_v9  ;;  %575 = vmatpush.bf16.msra.mxu1 %v786_v59 }
  0x1f   : > { %p885_p0 = pneg %p884_p13 }
  0x20   : > { %v359_v11 = vmul.f32 %v853_v8, %v358_v10 }
  0x21   : > { %p890_p5 = pnand %p889_p3, %p885_p0 }
  0x22   : > { %354 = vadd.xlane.f32.xlu0 %v353_v6  ;;  %v360_v12 = vadd.f32 %v853_v8, %v359_v11  ;;  %576 = vmatpush.bf16.msra.mxu1 %v785_v60  ;;  %v781_v6 = vld [vmem:[%s1157_s5] sm:$0xff] }
  0x24   : > { %v362_v13 = vsel %vm361_vm1, %v853_v8, %v360_v12 }
  0x26   : > { %577 = vmatpush.bf16.msra.mxu1 %v784_v61 }
  0x2a   : > { %578 = vmatpush.bf16.msra.mxu1 %v783_v0 }
  0x2e   : > { %579 = vmatpush.bf16.msra.mxu1 %v782_v3 }
  0x32   : > { %580 = vmatpush.bf16.msra.mxu1 %v781_v6 }
  0x8d   : > { %v352_v14 = vpop.xlane.xlu0 %351 }
  0x8e   : > { %v363_v15 = vmul.f32 %v362_v13, %v352_v14 }
  0x90   : > { %v365_v16 = vsub.f32 %v347_v1, %v363_v15 }
  0x92   : > { %v367_v17 = vmul.f32 %v365_v16, %v365_v16 }
  0x94   : > { %v369_v18 = vsel %vm349_vm0, %v367_v17, 0.0 }
  0x95   : > { %370 = vadd.xlane.f32.xlu1 %v369_v18  ;;  %v355_v19 = vpop.xlane.xlu0 %354 }
  0x96   : > { %v364_v20 = vmul.f32 %v362_v13, %v355_v19 }
  0x98   : > { %v366_v21 = vsub.f32 %v348_v2, %v364_v20 }
  0x9a   : > { %v368_v22 = vmul.f32 %v366_v21, %v366_v21 }
  0x9c   : > { %v372_v23 = vsel %vm349_vm0, %v368_v22, 0.0 }
  0x9d   : > { %373 = vadd.xlane.f32.xlu1 %v372_v23 }
 0x108   : > { %v371_v24 = vpop.xlane.xlu1 %370 }
 0x109   : > { %v375_v25 = vmul.f32 %v371_v24, %v362_v13 }
 0x10b   : > { %v377_v26 = vadd.f32 1e-05, %v375_v25 }
 0x10d   : > { %854 = vrsqrt.f32 %v377_v26  ;;  %vm385_vm3 = vweird.f32 %v377_v26 }
 0x110   : > { %v374_v29 = vpop.xlane.xlu1 %373 }
 0x111   : > { %v376_v30 = vmul.f32 %v374_v29, %v362_v13 }
 0x113   : > { %v855_v31 = vpop.eup %854  ;;  %v378_v32 = vadd.f32 1e-05, %v376_v30 }
 0x114   : > { %v380_v33 = vmul.f32 %v855_v31, %v377_v26  ;;  %vm386_vm2 = vweird.f32 %v855_v31 }
 0x115   : > { %856 = vrsqrt.f32 %v378_v32  ;;  %vm387_vm4 = vmor %vm385_vm3, %vm386_vm2  ;;  %vm395_vm6 = vweird.f32 %v378_v32 }
 0x116   : > { %v381_v34 = vmul.f32 %v855_v31, %v380_v33 }
 0x118   : > { %v382_v35 = vmul.f32 0.5, %v381_v34 }
 0x11a   : > { %v383_v36 = vsub.f32 1.5, %v382_v35 }
 0x11b   : > { %v857_v37 = vpop.eup %856 }
 0x11c   : > { %v384_v38 = vmul.f32 %v855_v31, %v383_v36  ;;  %v390_v39 = vmul.f32 %v857_v37, %v378_v32  ;;  %vm396_vm5 = vweird.f32 %v857_v37 }
 0x11d   : > { %vm397_vm7 = vmor %vm395_vm6, %vm396_vm5 }
 0x11e   : > { %v388_v41 = vsel %vm387_vm4, %v855_v31, %v384_v38  ;;  %v391_v42 = vmul.f32 %v857_v37, %v390_v39 }
 0x11f   : > { %v399_v44 = vmul.f32 %v388_v41, %v365_v16 }
 0x120   : > { %v392_v45 = vmul.f32 0.5, %v391_v42 }
 0x121   : > { %v405_v46 = vmul.f32 %v849_v40, %v399_v44 }
 0x122   : > { %v393_v47 = vsub.f32 1.5, %v392_v45 }
 0x123   : > { %v411_v48 = vadd.f32 %v850_v43, %v405_v46 }
 0x124   : > { %v394_v49 = vmul.f32 %v857_v37, %v393_v47 }
 0x125   : > { %413 = vst.msk [vmem:[#allocation2] sm:$0xff] %vm349_vm0, %v411_v48 }
 0x126   : > { %v398_v50 = vsel %vm397_vm7, %v857_v37, %v394_v49  ;;  %v506_v37 = vld [vmem:[%s1056_s30] sm:$0xff] }
 0x127   : > { %v400_v51 = vmul.f32 %v398_v50, %v366_v21 }
 0x129   : > { %v406_v52 = vmul.f32 %v849_v40, %v400_v51  ;;  %v507_v40 = vld [vmem:[%s1056_s30 + $0x8] sm:$0xff] }
 0x12b   : > { %v412_v53 = vadd.f32 %v850_v43, %v406_v52 }
 0x12c   : > { %v423_v54 = vld [vmem:[#allocation2] sm:$0xff] }
 0x12d   : > { %414 = vst.msk [vmem:[#allocation2 + $0x8] sm:$0xff] %vm349_vm0, %v412_v53 }
 0x134   : > { %v424_v55 = vld [vmem:[#allocation2 + $0x8] sm:$0xff] }
 0x135   : > { %v425_v56 = vpack.c.bf16 %v424_v55, %v423_v54 }
 0x137   : > { %738 = vmatmul.msk.bf16.vlgmr.msra.gmra.mxu0 %vm349_vm0, %v425_v56 }
 0x1b4   : > { %v459_v63 = vpop.f32.mrf.mxu0 }
 0x1b5   : > { %v460_v1 = vadd.f32 %v851_v62, %v459_v63 }
 0x1b7   : > { %v739_v2 = vmul.f32 -1.702, %v460_v1 }
 0x1b9   : > { %v468_v4 = vmul.f32 1.442695, %v739_v2 }
 0x1bb   : > { %858 = vpow2.f32 %v468_v4 }
 0x1bc   : > { %v461_v5 = vpop.f32.mrf.mxu0 }
 0x1bd   : > { %v462_v7 = vadd.f32 %v851_v62, %v461_v5 }
 0x1bf   : > { %v740_v8 = vmul.f32 -1.702, %v462_v7 }
 0x1c1   : > { %v859_v9 = vpop.eup %858  ;;  %v470_v10 = vmul.f32 1.442695, %v740_v8 }
 0x1c2   : > { %v472_v11 = vadd.f32 1.0, %v859_v9 }
 0x1c3   : > { %860 = vpow2.f32 %v470_v10 }
 0x1c4   : > { %862 = vrcp.f32 %v472_v11  ;;  %v485_v21 = vand.u32 2147483648, %v472_v11  ;;  %vm479_vm9 = vweird.f32 %v472_v11  ;;  %v483_v22 = vand.u32 2147483647, %v472_v11 }
 0x1c6   : > { %v486_v28 = vor.u32 1.1754944e-38, %v485_v21  ;;  %vm484_vm12 = vcmp.eq.f32.partialorder %v483_v22, 8.507059e+37 }
 0x1c9   : > { %v861_v12 = vpop.eup %860 }
 0x1ca   : > { %v863_v13 = vpop.eup %862  ;;  %v473_v14 = vadd.f32 1.0, %v861_v12 }
 0x1cb   : > { %v475_v15 = vmul.f32 %v863_v13, %v472_v11  ;;  %vm480_vm8 = vweird.f32 %v863_v13 }
 0x1cc   : > { %864 = vrcp.f32 %v473_v14  ;;  %vm481_vm10 = vmor %vm479_vm9, %vm480_vm8  ;;  %v500_v24 = vand.u32 2147483648, %v473_v14  ;;  %v498_v27 = vand.u32 2147483647, %v473_v14  ;;  %vm494_vm13 = vweird.f32 %v473_v14 }
 0x1cd   : > { %v476_v16 = vsub.f32 1.0, %v475_v15 }
 0x1ce   : > { %v501_v31 = vor.u32 1.1754944e-38, %v500_v24  ;;  %vm499_vm15 = vcmp.eq.f32.partialorder %v498_v27, 8.507059e+37 }
 0x1cf   : > { %v477_v17 = vmul.f32 %v863_v13, %v476_v16 }
 0x1d1   : > { %v478_v19 = vadd.f32 %v863_v13, %v477_v17 }
 0x1d2   : > { %v865_v18 = vpop.eup %864 }
 0x1d3   : > { %v490_v20 = vmul.f32 %v865_v18, %v473_v14  ;;  %v482_v25 = vsel %vm481_vm10, %v863_v13, %v478_v19  ;;  %vm495_vm11 = vweird.f32 %v865_v18 }
 0x1d4   : > { %v487_v30 = vsel %vm484_vm12, %v486_v28, %v482_v25  ;;  %vm496_vm14 = vmor %vm494_vm13, %vm495_vm11 }
 0x1d5   : > { %v491_v23 = vsub.f32 1.0, %v490_v20  ;;  %v504_v34 = vmul.f32 %v487_v30, %v460_v1 }
 0x1d7   : > { %v492_v26 = vmul.f32 %v865_v18, %v491_v23 }
 0x1d9   : > { %v493_v29 = vadd.f32 %v865_v18, %v492_v26 }
 0x1db   : > { %v497_v32 = vsel %vm496_vm14, %v865_v18, %v493_v29 }
 0x1dc   : > { %v502_v33 = vsel %vm499_vm15, %v501_v31, %v497_v32 }
 0x1dd   : > { %v505_v35 = vmul.f32 %v502_v33, %v462_v7 }
 0x1df   : > { %v508_v36 = vpack.c.bf16 %v505_v35, %v504_v34 }
 0x1e1   : > { %581 = vmatmul.bf16.vlgmr.msra.gmra.mxu1 %v508_v36 }
 0x25e   : > { %v582_v38 = vpop.f32.mrf.mxu1 }
 0x25f   : > { %v587_v39 = vadd.f32 %v582_v38, %v506_v37 }
 0x261   : > { %589 = vst.msk [vmem:[%s1056_s30] sm:$0xff] %vm349_vm0, %v587_v39 }
 0x266   : > { %v584_v41 = vpop.f32.mrf.mxu1 }
 0x267   : > { %v588_v42 = vadd.f32 %v584_v41, %v507_v40 }
 0x269   : > { %590 = vst.msk [vmem:[%s1056_s30 + $0x8] sm:$0xff] %vm349_vm0, %v588_v42 }
 0x26a   : > { %893 = shalt.err (!%p890_p5)
}
 0x26b   : > { %s947_s15 = smov 128   ;;  %s948_s30 = smov 8  }
 0x26c   : > { %790 = dma.vmem_to_hbm [thread:$0]  (%p1029_p4), %s605_s21, 256, %s607_s22, %s592_s27, %s947_s15, %s947_s15, %s948_s30  }
 0x26d PF: > { %p796_p6 = scmp.ge.s32.totalorder %s944_s29, 2  ;;  %s621_s19 = sand.u32 1, %s924_s24  }
 0x26e   : > { %s622_s20 = scalar_lea.sflag [#allocation4], %s621_s19 }
 0x26f   : > { %p793_p7 = pnand %p796_p6, %p1036_p8 }
 0x271   : > { %p794_p9 = pneg %p793_p7 }
 0x273   : > { %919 = dma.done.wait (%p794_p9), %s622_s20, 256  }
 0x274   : > { %921 = vsyncadd (%p794_p9), %s622_s20, 4294967040  ;;  %s20_s29 = sadd.s32 1, %s944_s29   ;;  %s1162_s24 = smov %s928_s25 }
 0x275   : > { %p17_p10 = scmp.ge.s32.totalorder %s20_s29, 4   ;;  %s1163_s25 = smov %s932_s26 }
 0x276   : > { %s1164_s26 = smov %s1042_s14  ;;  %s1165_s27 = smov %s940_s28 }
 0x277   : > { %s1166_s28 = smov %s1168_s9  ;;  %19 = sbr.rel (!%p17_p10) target bundleno = 4 (0x4), region = 96 }
 0x27c   :  { %628 = vsyncpa [#allocation4], 1 }
 0x27d   :  { %630 = vsyncpa [#allocation4 + $0x1], 1 }

// kernel: block_forward.4
= control target key start
LH: loop header
LB: loop body
LE: loop exit
PB: predicated region body
PF: predicated region fallthrough
CT: control target
= control target key end

     0   :  { %s1286_s17 = smov 0   ;;  %s1443_s0 = inlined_call_operand.vmem [shape: f32[2,16,32], index: 0, kind: input, shape index: {}]   ;;  %s1444_s1 = inlined_call_operand.vmem [shape: f32[2,8,32], index: 1, kind: input, shape index: {}]   ;;  %s1445_s2 = inlined_call_operand.vmem [shape: f32[2,1,32], index: 2, kind: input, shape index: {}]   ;;  %s1446_s3 = inlined_call_operand.vmem [shape: f32[2,1,32], index: 3, kind: input, shape index: {}]   ;;  %s1447_s4 = inlined_call_operand.vmem [shape: bf16[32,32], index: 4, kind: input, shape index: {}]   ;;  %s1448_s5 = inlined_call_operand.vmem [shape: f32[1,32], index: 5, kind: input, shape index: {}]   ;;  %s1449_s6 = inlined_call_operand.vmem [shape: bf16[32,64], index: 6, kind: input, shape index: {}]   ;;  %s1450_s7 = inlined_call_operand.vmem [shape: f32[1,64], index: 7, kind: input, shape index: {}]   ;;  %s1451_s8 = inlined_call_operand.vmem [shape: bf16[32,32], index: 8, kind: input, shape index: {}]   ;;  %s1452_s9 = inlined_call_operand.vmem [shape: f32[1,32], index: 9, kind: input, shape index: {}]   ;;  %s1453_s10 = inlined_call_operand.vmem [shape: f32[2,16,32], index: 10, kind: output, shape index: {0}]   ;;  %s1454_s11 = inlined_call_operand.vmem [shape: f32[2,16,8], index: 11, kind: output, shape index: {1}]  }
   0x1 LB: > { %s1073_s18 = sadd.s32 4294967295, %s1213_s17   ;;  %p1077_p0 = scmp.ge.s32.totalorder %s1213_s17, 1  ;;  %s1213_s17 = sphi %s1286_s17, %s22_s17  }
   0x2   : > { %p365_p1 = scmp.lt.s32.totalorder %s1213_s17, 3 }
   0x4   : > { %p366_p2 = pnand %p1077_p0, %p365_p1 }
   0x5   : > { %p420_p3 = scmp.lt.s32.totalorder (!%p366_p2), %s1073_s18, 1  ;;  %s1216_s30 = smov (!%p366_p2), 120  }
   0x6   : > { %369 = sbr.rel (%p366_p2) target bundleno = 1663 (0x67f), region = 60  ;;  %s1218_s13 = smov (!%p366_p2), 112  }
   0x7   : > { %s1219_s14 = smov (!%p366_p2), 104   ;;  %s1220_s15 = smov (!%p366_p2), 88  }
   0x8   : > { %s1221_s16 = smov (!%p366_p2), 80   ;;  %s1222_s20 = smov (!%p366_p2), 72  }
   0x9   : > { %s1224_s26 = smov (!%p366_p2), 24   ;;  %s1225_s27 = smov (!%p366_p2), 16  }
   0xb   : > { %s1456_s18 = smov (!%p420_p3, %s1073_s18), 1  ;;  %vm448_vm0 = vcmask 261120   ;;  %v1215_v4 = vmov 32.0   ;;  %v1128_v21 = vld [vmem:[%s1449_s6 + $0x8] sm:$0xff]  ;;  %v1127_v22 = vld [vmem:[%s1449_s6] sm:$0xff]  ;;  %vm598_vm8 = vcmask 64512  }
   0xc   : > { %s1297_s19 = sshll.u32 %s1456_s18, 4  ;;  %1169 = vrcp.f32 %v1215_v4  ;;  %s434_s25 = scalar_lea.vmem %s1446_s3, %s1456_s18  ;;  %582 = vmatpush.bf16.msra.mxu1 %v1128_v21  ;;  %v1126_v23 = vld [vmem:[%s1447_s4 + $0x8] sm:$0xff]  ;;  %v1125_v27 = vld [vmem:[%s1447_s4] sm:$0xff]  ;;  %vm650_vm9 = vcmask 1043456   ;;  %vm908_vm10 = vcmask 130048   ;;  %vm911_vm11 = vcmask 195584  }
   0xd   : > { %s424_s22 = scalar_lea.vmem %s1443_s0, %s1297_s19  ;;  %s1080_s28 = sshll.u32 %s1456_s18, 3  ;;  %543 = vmatpush.bf16.msra.mxu0 %v1126_v23  ;;  %v1165_v53 = vld [vmem:[%s434_s25] ss:$0 sm:$0xff] }
   0xe   : > { %v1303_v0 = vld [vmem:[%s424_s22] sm:$0xff]  ;;  %v1307_v2 = vld [vmem:[%s424_s22 + $0x8] sm:$0xff]  ;;  %s428_s12 = scalar_lea.vmem %s1444_s1, %s1080_s28  ;;  %s431_s24 = scalar_lea.vmem %s1445_s2, %s1456_s18 }
   0xf   : > { %v449_v1 = vsel %vm448_vm0, %v1303_v0, 0.0  ;;  %v452_v3 = vsel %vm448_vm0, %v1307_v2, 0.0  ;;  %v551_v24 = vld [vmem:[%s428_s12] sm:$0xff]  ;;  %s1217_s12 = smov 96   ;;  %s444_s23 = scalar_lea.vmem %s1454_s11, %s1297_s19 }
  0x10   : > { %450 = vadd.xlane.f32.xlu0 %v449_v1  ;;  %583 = vmatpush.bf16.msra.mxu1 %v1127_v22  ;;  %v552_v25 = vpack.c.bf16 %v551_v24, %v551_v24  ;;  %v500_v41 = vld [vmem:[%s431_s24] sm:$0x1]  ;;  %s1223_s24 = smov 8  }
  0x11   : > { %544 = vmatpush.bf16.msra.mxu0 %v1125_v27  ;;  %v501_v43 = vadd.f32 1.0, %v500_v41  ;;  %v1166_v58 = vld [vmem:[%s1450_s7] ss:$0 sm:$0xff] }
  0x12   : > { %v1170_v5 = vpop.eup %1169 }
  0x13   : > { %v456_v6 = vmul.f32 32.0, %v1170_v5  ;;  %vm460_vm1 = vweird.f32 %v1170_v5  ;;  %1102 = vmatmul.msk.bf16.vlgmr.msra.gmra.mxu1 %vm448_vm0, %v552_v25  ;;  %v503_v48 = vperm.slane %v501_v43, 0 }
  0x15   : > { %v457_v7 = vsub.f32 1.0, %v456_v6 }
  0x17   : > { %v458_v8 = vmul.f32 %v1170_v5, %v457_v7 }
  0x18   : > { %453 = vadd.xlane.f32.xlu0 %v452_v3  ;;  %v1167_v3 = vld [vmem:[%s1448_s5] ss:$0 sm:$0xff] }
  0x19   : > { %v459_v9 = vadd.f32 %v1170_v5, %v458_v8 }
  0x1b   : > { %v461_v10 = vsel %vm460_vm1, %v1170_v5, %v459_v9 }
  0x83   : > { %v451_v11 = vpop.xlane.xlu0 %450 }
  0x84   : > { %v462_v12 = vmul.f32 %v461_v10, %v451_v11 }
  0x86   : > { %v464_v13 = vsub.f32 %v1303_v0, %v462_v12 }
  0x88   : > { %v466_v14 = vmul.f32 %v464_v13, %v464_v13 }
  0x8a   : > { %v468_v15 = vsel %vm448_vm0, %v466_v14, 0.0 }
  0x8b   : > { %469 = vadd.xlane.f32.xlu1 %v468_v15  ;;  %v454_v16 = vpop.xlane.xlu0 %453 }
  0x8c   : > { %v463_v17 = vmul.f32 %v461_v10, %v454_v16 }
  0x8e   : > { %v465_v18 = vsub.f32 %v1307_v2, %v463_v17 }
  0x90   : > { %v467_v19 = vmul.f32 %v465_v18, %v465_v18  ;;  %v585_v59 = vpop.f32.mrf.mxu1 }
  0x91   : > { %v586_v60 = vadd.f32 %v1166_v58, %v585_v59 }
  0x92   : > { %v471_v20 = vsel %vm448_vm0, %v467_v19, 0.0 }
  0x93   : > { %472 = vadd.xlane.f32.xlu1 %v471_v20  ;;  %v1349_v61 = vpack.c.bf16 %v586_v60, %v586_v60 }
  0x95   : > { %671 = vrot.lane.b32.xlu0 %v1349_v61, %s1216_s30  ;;  %v603_v63 = vsel %vm598_vm8, %v1349_v61, 0 }
  0x96   : > { %612 = vmatpush.bf16.xpose.msra.mxu2 %v603_v63 }
  0x98   : > { %v587_v62 = vpop.f32.mrf.mxu1 }
  0xfe   : > { %v470_v26 = vpop.xlane.xlu1 %469 }
  0xff   : > { %v474_v28 = vmul.f32 %v470_v26, %v461_v10 }
 0x101   : > { %v476_v29 = vadd.f32 1e-05, %v474_v28 }
 0x103   : > { %1171 = vrsqrt.f32 %v476_v29  ;;  %vm484_vm3 = vweird.f32 %v476_v29 }
 0x106   : > { %v473_v30 = vpop.xlane.xlu1 %472 }
 0x107   : > { %v475_v31 = vmul.f32 %v473_v30, %v461_v10  ;;  %v672_v22 = vpop.permute.xlu0 %671 }
 0x108   : > { %v677_v25 = vsel %vm598_vm8, %v672_v22, 0 }
 0x109   : > { %v1172_v32 = vpop.eup %1171  ;;  %v477_v33 = vadd.f32 1e-05, %v475_v31 }
 0x10a   : > { %v479_v34 = vmul.f32 %v1172_v32, %v476_v29  ;;  %vm485_vm2 = vweird.f32 %v1172_v32 }
 0x10b   : > { %1173 = vrsqrt.f32 %v477_v33  ;;  %vm486_vm4 = vmor %vm484_vm3, %vm485_vm2  ;;  %vm494_vm6 = vweird.f32 %v477_v33 }
 0x10c   : > { %v480_v35 = vmul.f32 %v1172_v32, %v479_v34 }
 0x10e   : > { %v481_v36 = vmul.f32 0.5, %v480_v35 }
 0x110   : > { %v482_v37 = vsub.f32 1.5, %v481_v36 }
 0x111   : > { %v1174_v38 = vpop.eup %1173 }
 0x112   : > { %v483_v39 = vmul.f32 %v1172_v32, %v482_v37  ;;  %v489_v40 = vmul.f32 %v1174_v38, %v477_v33  ;;  %vm495_vm5 = vweird.f32 %v1174_v38 }
 0x113   : > { %vm496_vm7 = vmor %vm494_vm6, %vm495_vm5 }
 0x114   : > { %v490_v42 = vmul.f32 %v1174_v38, %v489_v40  ;;  %v487_v44 = vsel %vm486_vm4, %v1172_v32, %v483_v39 }
 0x115   : > { %v498_v47 = vmul.f32 %v487_v44, %v464_v13 }
 0x116   : > { %v491_v45 = vmul.f32 0.5, %v490_v42 }
 0x117   : > { %v505_v52 = vmul.f32 %v503_v48, %v498_v47 }
 0x118   : > { %v492_v46 = vsub.f32 1.5, %v491_v45 }
 0x119   : > { %v511_v55 = vadd.f32 %v1165_v53, %v505_v52 }
 0x11a   : > { %v493_v49 = vmul.f32 %v1174_v38, %v492_v46 }
 0x11c   : > { %v497_v50 = vsel %vm496_vm7, %v1174_v38, %v493_v49 }
 0x11d   : > { %v499_v51 = vmul.f32 %v497_v50, %v465_v18 }
 0x11f   : > { %v506_v54 = vmul.f32 %v503_v48, %v499_v51 }
 0x121   : > { %v512_v56 = vadd.f32 %v1165_v53, %v506_v54 }
 0x123   : > { %v513_v57 = vpack.c.bf16 %v512_v56, %v511_v55 }
 0x125   : > { %1093 = vmatmul.msk.bf16.vlgmr.msra.gmra.mxu0 %vm448_vm0, %v513_v57 }
 0x1a2   : > { %v546_v1 = vpop.f32.mrf.mxu0 }
 0x1a3   : > { %v547_v4 = vadd.f32 %v1167_v3, %v546_v1 }
 0x1a5   : > { %v594_v7 = vmul.f32 0.35355338, %v547_v4 }
 0x1aa   : > { %v548_v5 = vpop.f32.mrf.mxu0 }
 0x1ab   : > { %v549_v6 = vadd.f32 %v1167_v3, %v548_v5 }
 0x1ad   : > { %v595_v8 = vmul.f32 0.35355338, %v549_v6 }
 0x1af   : > { %v596_v9 = vpack.c.bf16 %v595_v8, %v594_v7 }
 0x1b1   : > { %1103 = vmatmul.msk.bf16.vlgmr.msra.gmra.mxu2 %vm598_vm8, %v596_v9 }
 0x234   : > { %v614_v10 = vpop.f32.mrf.mxu2 }
 0x235   : > { %v619_v11 = vsel %vm598_vm8, %v614_v10, -inf }
 0x236   : > { %620 = vmax.xlane.f32.xlu2 %v619_v11 }
 0x23c   : > { %v616_v12 = vpop.f32.mrf.mxu2 }
 0x23d   : > { %v622_v13 = vsel %vm598_vm8, %v616_v12, -inf }
 0x23e   : > { %623 = vmax.xlane.f32.xlu2 %v622_v13 }
 0x256   : > { %645 = vrot.lane.b32.xlu2 %v1349_v61, %s1217_s12 }
 0x25e   : > { %742 = vrot.lane.b32.xlu2 %v1349_v61, %s1218_s13 }
 0x266   : > { %740 = vrot.lane.b32.xlu2 %v596_v9, %s1218_s13 }
 0x2a9   : > { %v621_v14 = vpop.xlane.xlu2 %620 }
 0x2aa   : > { %v625_v15 = vsub.f32 %v614_v10, %v621_v14 }
 0x2ac   : > { %v627_v16 = vmul.f32 1.442695, %v625_v15 }
 0x2ae   : > { %1175 = vpow2.f32 %v627_v16 }
 0x2b1   : > { %v624_v17 = vpop.xlane.xlu2 %623 }
 0x2b2   : > { %v626_v18 = vsub.f32 %v616_v12, %v624_v17 }
 0x2b4   : > { %v1176_v19 = vpop.eup %1175  ;;  %v629_v20 = vmul.f32 1.442695, %v626_v18 }
 0x2b5   : > { %v631_v21 = vsel %vm598_vm8, %v1176_v19, 0.0 }
 0x2b6   : > { %1177 = vpow2.f32 %v629_v20  ;;  %632 = vadd.xlane.f32.xlu0 %v631_v21 }
 0x2b9   : > { %v646_v23 = vpop.permute.xlu2 %645 }
 0x2ba   : > { %v652_v24 = vsel %vm650_vm9, %v646_v23, 0 }
 0x2bb   : > { %661 = vmatpush.bf16.msra.mxu3 %v652_v24 }
 0x2bc   : > { %v1178_v26 = vpop.eup %1177 }
 0x2bd   : > { %v634_v27 = vsel %vm598_vm8, %v1178_v26, 0.0 }
 0x2be   : > { %635 = vadd.xlane.f32.xlu1 %v634_v27 }
 0x2bf   : > { %686 = vmatpush.bf16.xpose.msrb.mxu3 %v677_v25 }
 0x2c1   : > { %v743_v28 = vpop.permute.xlu2 %742 }
 0x2c2   : > { %v748_v29 = vsel %vm598_vm8, %v743_v28, 0 }
 0x2c3   : > { %757 = vmatpush.bf16.xpose.msrb.mxu1 %v748_v29 }
 0x2c9   : > { %v741_v30 = vpop.permute.xlu2 %740 }
 0x2ca   : > { %813 = vrot.lane.b32.xlu0 %v1349_v61, %s1219_s14  ;;  %1107 = vmatmul.msk.bf16.vlgmr.msrb.gmra.mxu1 %vm598_vm8, %v741_v30 }
 0x2d7   : > { %669 = vrot.lane.b32.xlu1 %v596_v9, %s1216_s30 }
 0x2df   : > { %811 = vrot.lane.b32.xlu1 %v596_v9, %s1219_s14 }
 0x329   : > { %v633_v31 = vpop.xlane.xlu0 %632 }
 0x32a   : > { %1179 = vrcp.f32 %v633_v31 }
 0x330   : > { %v1180_v33 = vpop.eup %1179 }
 0x331   : > { %v636_v32 = vpop.xlane.xlu1 %635  ;;  %v1371_v35 = vmul.f32 %v1180_v33, %v1176_v19 }
 0x332   : > { %1181 = vrcp.f32 %v636_v32 }
 0x338   : > { %v1182_v34 = vpop.eup %1181 }
 0x339   : > { %v1373_v36 = vmul.f32 %v1182_v34, %v1178_v26 }
 0x33b   : > { %v643_v37 = vpack.c.bf16 %v1373_v36, %v1371_v35 }
 0x33c   : > { %v814_v38 = vpop.permute.xlu0 %813 }
 0x33d   : > { %v819_v39 = vsel %vm598_vm8, %v814_v38, 0  ;;  %1104 = vmatmul.msk.bf16.vlgmr.msra.gmra.mxu3 %vm598_vm8, %v643_v37 }
 0x33e   : > { %828 = vmatpush.bf16.xpose.msra.mxu3 %v819_v39 }
 0x347   : > { %v759_v40 = vpop.f32.mrf.mxu1 }
 0x348   : > { %v764_v41 = vsel %vm598_vm8, %v759_v40, -inf }
 0x349   : > { %765 = vmax.xlane.f32.xlu1 %v764_v41  ;;  %v670_v42 = vpop.permute.xlu1 %669 }
 0x34d   : > { %1105 = vmatmul.msk.bf16.vlgmr.msrb.gmra.mxu3 %vm598_vm8, %v670_v42 }
 0x34f   : > { %v761_v51 = vpop.f32.mrf.mxu1 }
 0x350   : > { %v767_v53 = vsel %vm598_vm8, %v761_v51, -inf }
 0x351   : > { %v812_v43 = vpop.permute.xlu1 %811 }
 0x35d   : > { %1109 = vmatmul.msk.bf16.vlgmr.msra.gmra.mxu3 %vm598_vm8, %v812_v43 }
 0x3bc   : > { %v766_v46 = vpop.xlane.xlu1 %765 }
 0x3bd   : > { %v770_v47 = vsub.f32 %v759_v40, %v766_v46 }
 0x3bf   : > { %v772_v50 = vmul.f32 1.442695, %v770_v47 }
 0x3c0   : > { %v1382_v44 = vpop.f32.mrf.mxu3 }
 0x3c1   : > { %1183 = vpow2.f32 %v772_v50 }
 0x3c7   : > { %v1389_v55 = vpop.eup %1183 }
 0x3c8   : > { %v1384_v45 = vpop.f32.mrf.mxu3  ;;  %v776_v57 = vsel %vm598_vm8, %v1389_v55, 0.0 }
 0x3d0   : > { %v688_v48 = vpop.f32.mrf.mxu3 }
 0x3d1   : > { %v693_v49 = vsel %vm598_vm8, %v688_v48, -inf }
 0x3d2   : > { %694 = vmax.xlane.f32.xlu0 %v693_v49 }
 0x3d8   : > { %v690_v52 = vpop.f32.mrf.mxu3 }
 0x3d9   : > { %v696_v54 = vsel %vm598_vm8, %v690_v52, -inf }
 0x3da   : > { %768 = vmax.xlane.f32.xlu0 %v767_v53  ;;  %697 = vmax.xlane.f32.xlu2 %v696_v54 }
 0x3e0   : > { %v830_v56 = vpop.f32.mrf.mxu3 }
 0x3e1   : > { %v835_v58 = vsel %vm598_vm8, %v830_v56, -inf }
 0x3e2   : > { %777 = vadd.xlane.f32.xlu0 %v776_v57  ;;  %836 = vmax.xlane.f32.xlu2 %v835_v58 }
 0x3e8   : > { %v832_v59 = vpop.f32.mrf.mxu3 }
 0x3e9   : > { %v838_v60 = vsel %vm598_vm8, %v832_v59, -inf }
 0x3ea   : > { %839 = vmax.xlane.f32.xlu1 %v838_v60 }
 0x403   : > { %718 = vrot.lane.b32.xlu1 %v1349_v61, %s1220_s15  ;;  %s439_s15 = scalar_lea.vmem %s1453_s10, %s1297_s19 }
 0x445   : > { %v695_v62 = vpop.xlane.xlu0 %694 }
 0x446   : > { %v699_v63 = vsub.f32 %v688_v48, %v695_v62 }
 0x448   : > { %v701_v1 = vmul.f32 1.442695, %v699_v63 }
 0x44a   : > { %1185 = vpow2.f32 %v701_v1 }
 0x44d   : > { %v698_v3 = vpop.xlane.xlu2 %697  ;;  %v769_v4 = vpop.xlane.xlu0 %768 }
 0x44e   : > { %v771_v5 = vsub.f32 %v761_v51, %v769_v4  ;;  %v700_v8 = vsub.f32 %v690_v52, %v698_v3 }
 0x450   : > { %v1186_v6 = vpop.eup %1185  ;;  %v774_v7 = vmul.f32 1.442695, %v771_v5  ;;  %v703_v10 = vmul.f32 1.442695, %v700_v8 }
 0x451   : > { %v705_v9 = vsel %vm598_vm8, %v1186_v6, 0.0 }
 0x452   : > { %706 = vadd.xlane.f32.xlu0 %v705_v9  ;;  %1187 = vpow2.f32 %v774_v7  ;;  %v1130_v9 = vld [vmem:[%s1451_s8 + $0x8] sm:$0xff] }
 0x453   : > { %1189 = vpow2.f32 %v703_v10  ;;  %939 = vmatpush.bf16.msra.mxu1 %v1130_v9  ;;  %v1129_v10 = vld [vmem:[%s1451_s8] sm:$0xff] }
 0x455   : > { %v837_v11 = vpop.xlane.xlu2 %836  ;;  %v778_v27 = vpop.xlane.xlu0 %777 }
 0x456   : > { %v841_v12 = vsub.f32 %v830_v56, %v837_v11 }
 0x457   : > { %940 = vmatpush.bf16.msra.mxu1 %v1129_v10 }
 0x458   : > { %v843_v13 = vmul.f32 1.442695, %v841_v12  ;;  %v1188_v14 = vpop.eup %1187 }
 0x459   : > { %v779_v15 = vsel %vm598_vm8, %v1188_v14, 0.0  ;;  %v1190_v18 = vpop.eup %1189 }
 0x45a   : > { %1191 = vpow2.f32 %v843_v13  ;;  %780 = vadd.xlane.f32.xlu2 %v779_v15  ;;  %v708_v22 = vsel %vm598_vm8, %v1190_v18, 0.0 }
 0x45d   : > { %v840_v16 = vpop.xlane.xlu1 %839 }
 0x45e   : > { %v842_v17 = vsub.f32 %v832_v59, %v840_v16 }
 0x460   : > { %v1192_v19 = vpop.eup %1191  ;;  %v845_v20 = vmul.f32 1.442695, %v842_v17 }
 0x461   : > { %v847_v21 = vsel %vm598_vm8, %v1192_v19, 0.0 }
 0x462   : > { %1193 = vpow2.f32 %v845_v20  ;;  %848 = vadd.xlane.f32.xlu0 %v847_v21  ;;  %709 = vadd.xlane.f32.xlu2 %v708_v22 }
 0x468   : > { %v1194_v23 = vpop.eup %1193 }
 0x469   : > { %v850_v24 = vsel %vm598_vm8, %v1194_v23, 0.0 }
 0x46a   : > { %851 = vadd.xlane.f32.xlu2 %v850_v24 }
 0x475   : > { %v719_v25 = vpop.permute.xlu1 %718 }
 0x476   : > { %789 = vrot.lane.b32.xlu0 %v1349_v61, %s1221_s16  ;;  %v724_v26 = vsel %vm650_vm9, %v719_v25, 0 }
 0x477   : > { %733 = vmatpush.bf16.msrb.mxu0 %v724_v26 }
 0x482   : > { %860 = vrot.lane.b32.xlu2 %v1349_v61, %s1222_s20 }
 0x4c5   : > { %v707_v28 = vpop.xlane.xlu0 %706 }
 0x4c6   : > { %1195 = vrcp.f32 %v707_v28 }
 0x4c7   : > { %1197 = vrcp.f32 %v778_v27  ;;  %v1168_v27 = vld [vmem:[%s1452_s9] ss:$0 sm:$0xff] }
 0x4cc   : > { %v1196_v30 = vpop.eup %1195 }
 0x4cd   : > { %v781_v29 = vpop.xlane.xlu2 %780  ;;  %v713_v31 = vmul.f32 %v1196_v30, %v1186_v6  ;;  %v1198_v34 = vpop.eup %1197 }
 0x4ce   : > { %v784_v38 = vmul.f32 %v1198_v34, %v1389_v55 }
 0x4cf   : > { %v715_v37 = vadd.f32 %v713_v31, %v1371_v35 }
 0x4d1   : > { %v786_v40 = vadd.f32 %v784_v38, %v715_v37 }
 0x4d5   : > { %v849_v32 = vpop.xlane.xlu0 %848  ;;  %v710_v33 = vpop.xlane.xlu2 %709 }
 0x4d6   : > { %1199 = vrcp.f32 %v849_v32 }
 0x4d7   : > { %1201 = vrcp.f32 %v710_v33 }
 0x4d8   : > { %1203 = vrcp.f32 %v781_v29 }
 0x4dc   : > { %v1200_v39 = vpop.eup %1199 }
 0x4dd   : > { %v1202_v61 = vpop.eup %1201  ;;  %v855_v41 = vmul.f32 %v1200_v39, %v1192_v19  ;;  %v852_v43 = vpop.xlane.xlu2 %851 }
 0x4de   : > { %v714_v42 = vmul.f32 %v1202_v61, %v1190_v18  ;;  %1205 = vrcp.f32 %v852_v43  ;;  %v1204_v48 = vpop.eup %1203 }
 0x4df   : > { %v857_v46 = vadd.f32 %v855_v41, %v786_v40  ;;  %v785_v50 = vmul.f32 %v1204_v48, %v1188_v14 }
 0x4e0   : > { %v717_v47 = vpack.c.bf16 %v714_v42, %v713_v31  ;;  %v716_v35 = vadd.f32 %v714_v42, %v1373_v36 }
 0x4e1   : > { %v947_v49 = vmul.f32 0.25, %v857_v46  ;;  %v788_v60 = vpack.c.bf16 %v785_v50, %v784_v38 }
 0x4e2   : > { %1106 = vmatmul.msk.bf16.vlgmr.msrb.gmra.mxu0 %vm598_vm8, %v717_v47  ;;  %v787_v52 = vadd.f32 %v785_v50, %v716_v35 }
 0x4e3   : > { %953 = vst.msk [vmem:[%s444_s23] sm:$0xff] %vm598_vm8, %v947_v49 }
 0x4e4   : > { %v1206_v51 = vpop.eup %1205 }
 0x4e5   : > { %v856_v53 = vmul.f32 %v1206_v51, %v1194_v23  ;;  %v861_v54 = vpop.permute.xlu2 %860 }
 0x4e6   : > { %v866_v55 = vsel %vm650_vm9, %v861_v54, 0 }
 0x4e7   : > { %v858_v56 = vadd.f32 %v856_v53, %v787_v52  ;;  %875 = vmatpush.bf16.msra.mxu0 %v866_v55  ;;  %v859_v36 = vpack.c.bf16 %v856_v53, %v855_v41 }
 0x4e8   : > { %v790_v57 = vpop.permute.xlu0 %789 }
 0x4e9   : > { %v795_v58 = vsel %vm650_vm9, %v790_v57, 0  ;;  %v948_v59 = vmul.f32 0.25, %v858_v56 }
 0x4ea   : > { %804 = vmatpush.bf16.msrb.mxu2 %v795_v58 }
 0x4eb   : > { %954 = vst.msk [vmem:[%s444_s23 + $0x8] sm:$0xff] %vm598_vm8, %v948_v59 }
 0x4ed   : > { %1108 = vmatmul.msk.bf16.vlgmr.msrb.gmra.mxu2 %vm598_vm8, %v788_v60 }
 0x4f2   : > { %1110 = vmatmul.msk.bf16.vlgmr.msra.gmra.mxu0 %vm598_vm8, %v859_v36 }
 0x55f   : > { %v735_v62 = vpop.f32.mrf.mxu0 }
 0x567   : > { %v737_v63 = vpop.f32.mrf.mxu0 }
 0x568   : > { %v1150_v1 = vpack.i.bf16 %v737_v63, %v735_v62 }
 0x56a   : > { %1151 = vrot.lane.b32.xlu1 %v1150_v1, %s1223_s24 }
 0x56f   : > { %v877_v3 = vpop.f32.mrf.mxu0 }
 0x570   : > { %v806_v4 = vpop.f32.mrf.mxu2 }
 0x577   : > { %v879_v5 = vpop.f32.mrf.mxu0 }
 0x578   : > { %v1160_v6 = vpack.i.bf16 %v879_v5, %v877_v3  ;;  %v808_v7 = vpop.f32.mrf.mxu2 }
 0x579   : > { %v1155_v8 = vpack.i.bf16 %v808_v7, %v806_v4 }
 0x57a   : > { %1161 = vrot.lane.b32.xlu0 %v1160_v6, %s1224_s26 }
 0x57b   : > { %1156 = vrot.lane.b32.xlu1 %v1155_v8, %s1225_s27 }
 0x5dc   : > { %v1152_v11 = vpop.permute.xlu1 %1151 }
 0x5dd   : > { %v1154_v12 = vunpack.i.h.bf16 %v1152_v11  ;;  %v1153_v13 = vunpack.i.l.bf16 %v1152_v11 }
 0x5df   : > { %v907_v18 = vsel %vm598_vm8, %v1384_v45, %v1154_v12  ;;  %v906_v19 = vsel %vm598_vm8, %v1382_v44, %v1153_v13 }
 0x5ec   : > { %v1162_v14 = vpop.permute.xlu0 %1161 }
 0x5ed   : > { %v1157_v15 = vpop.permute.xlu1 %1156  ;;  %v1164_v20 = vunpack.i.h.bf16 %v1162_v14  ;;  %v1163_v21 = vunpack.i.l.bf16 %v1162_v14 }
 0x5ee   : > { %v1159_v16 = vunpack.i.h.bf16 %v1157_v15  ;;  %v1158_v17 = vunpack.i.l.bf16 %v1157_v15 }
 0x5f0   : > { %v910_v22 = vsel %vm908_vm10, %v907_v18, %v1159_v16  ;;  %v909_v23 = vsel %vm908_vm10, %v906_v19, %v1158_v17 }
 0x5f1   : > { %v912_v24 = vsel %vm911_vm11, %v909_v23, %v1163_v21  ;;  %v913_v25 = vsel %vm911_vm11, %v910_v22, %v1164_v20 }
 0x5f2   : > { %v914_v26 = vpack.c.bf16 %v913_v25, %v912_v24 }
 0x5f4   : > { %1119 = vmatmul.msk.bf16.vlgmr.msra.gmra.mxu1 %vm448_vm0, %v914_v26 }
 0x671   : > { %v942_v28 = vpop.f32.mrf.mxu1 }
 0x672   : > { %v943_v29 = vadd.f32 %v1168_v27, %v942_v28 }
 0x674   : > { %v949_v44 = vadd.f32 %v943_v29, %v1303_v0 }
 0x676   : > { %951 = vst.msk [vmem:[%s439_s15] sm:$0xff] %vm448_vm0, %v949_v44 }
 0x679   : > { %v944_v45 = vpop.f32.mrf.mxu1 }
 0x67a   : > { %v945_v30 = vadd.f32 %v1168_v27, %v944_v45 }
 0x67c   : > { %v950_v31 = vadd.f32 %v945_v30, %v1307_v2 }
 0x67e   : > { %952 = vst.msk [vmem:[%s439_s15 + $0x8] sm:$0xff] %vm448_vm0, %v950_v31 }
 0x67f PF: > { %s22_s17 = sadd.s32 1, %s1213_s17  }
 0x680   : > { %p19_p4 = scmp.ge.s32.totalorder %s22_s17, 4  }
 0x682   :  { %21 = sbr.rel (!%p19_p4) target bundleno = 1 (0x1), region = 111 }

</bundles_post_ra>
